<compile_context>
chip_gen: v6e
topology: v6e:2x2x1
jax: 0.10.0
libtpu: 0.0.40
codegen_flags: <defaults>
</compile_context>

<pallas_src>
import jax
import jax.numpy as jnp
from jax.experimental import pallas as pl
from jax.experimental.pallas import tpu as pltpu


# ---------------------------------------------------------------------------
# Model dimensions (natural + TPU-padded)
# ---------------------------------------------------------------------------
VOCAB_SIZE_DICT = {'index': 4, 'pitch': 20, 'duration': 16,
                   'offset': 12, 'dynamic': 6}
EMB_SIZE = 8
HIDDEN = 32
OUT_VOCAB = VOCAB_SIZE_DICT['pitch'] + VOCAB_SIZE_DICT['duration']   # 36

# (8, 128)-friendly padded shapes (f32: 8 sublanes x 128 lanes).
B_PAD = 8        # batch  -> sublane-dense
E_PAD = 128      # real embedding width = 5 * 8 = 40
H_PAD = 128      # real hidden = 32 ; gates packed r|z|n at stride 32
V_PAD = 128      # real output vocab = 36

# GRU weight slab row layout (lanes are always 128 wide, gate-packed).
W_IH_ROW = 0                    # rows [  0:128) : W_ih  (real rows 0:40)
W_HH_ROW = E_PAD                # rows [128:256) : W_hh  (real rows 0:32)
B_IH_ROW = E_PAD + H_PAD        # row   256      : b_ih
B_HH_ROW = B_IH_ROW + 8         # row   264      : b_hh   (tile-aligned)
GRU_SLAB_ROWS = B_HH_ROW + 8    # 272 rows total (multiple of 8)

# Projection slab row layout.
PROJ_B_ROW = H_PAD              # row 128 : bias
PROJ_SLAB_ROWS = PROJ_B_ROW + 8  # 136 rows total


# ---------------------------------------------------------------------------
# Fused Pallas kernel: encoder GRU -> decoder GRU -> projection
# (PyTorch nn.GRU cell semantics, gate order r, z, n)
# ---------------------------------------------------------------------------
def _seq2seq_fused_kernel(x_enc_ref, x_dec_ref,
                          enc_w_ref, dec_w_ref, proj_ref,
                          logits_ref):
    T_enc, B, E = x_enc_ref.shape
    T_dec = x_dec_ref.shape[0]
    H = HIDDEN

    zpad = jnp.zeros((B, H_PAD - H), jnp.float32)     # hoisted out of the loop

    def run_gru(x_ref, w_ref, h0, T, collect):
        wih = w_ref[W_IH_ROW:W_IH_ROW + E_PAD, :]     # (128, 128) gate-packed
        whh = w_ref[W_HH_ROW:W_HH_ROW + H_PAD, :]     # (128, 128) gate-packed
        bih = w_ref[B_IH_ROW:B_IH_ROW + 1, :]         # (1, 128)
        bhh = w_ref[B_HH_ROW:B_HH_ROW + 1, :]         # (1, 128)

        # All T input projections in ONE MXU dot, hoisted out of the
        # recurrence:  gi[t] = x[t] @ W_ih + b_ih   (lane layout r|z|n|0)
        x_flat = x_ref[...].reshape(T * B, E)
        gi_all = (jnp.dot(x_flat, wih, preferred_element_type=jnp.float32)
                  + bih).reshape(T, B, H_PAD)

        h = h0                                        # (B, 128), lanes 32: == 0
        hs = []
        for t in range(T):                            # T static & tiny -> unrolled
            gi = gi_all[t]                                            # (B, 128)
            # Single 128-wide recurrent MXU tile (was 3 tiles / 384 lanes).
            gh = jnp.dot(h, whh, preferred_element_type=jnp.float32) + bhh
            s = gi + gh
            r = jax.nn.sigmoid(s[:, 0:H])                             # (B, 32)
            z = jax.nn.sigmoid(s[:, H:2 * H])
            n = jnp.tanh(gi[:, 2 * H:3 * H] + r * gh[:, 2 * H:3 * H])
            h32 = (1.0 - z) * n + z * h[:, 0:H]
            h = jnp.concatenate([h32, zpad], axis=1)  # keep padded lanes == 0
            if collect:
                hs.append(h)
        return h, hs

    # --- Encoder: only the final hidden state is consumed downstream. ---
    h0 = jnp.zeros((B, H_PAD), jnp.float32)
    h_enc, _ = run_gru(x_enc_ref, enc_w_ref, h0, T_enc, collect=False)

    # --- Decoder GRU (projection hoisted OUT of the recurrence). ---
    _, hs = run_gru(x_dec_ref, dec_w_ref, h_enc, T_dec, collect=True)

    # --- Output projection: ONE (T*B,128)@(128,128) dot + one dense store. ---
    h_all = jnp.concatenate(hs, axis=0)                           # (T_dec*B, 128)
    wproj = proj_ref[0:H_PAD, :]
    bproj = proj_ref[PROJ_B_ROW:PROJ_B_ROW + 1, :]
    logits = jnp.dot(h_all, wproj, preferred_element_type=jnp.float32) + bproj
    logits_ref[...] = logits.reshape(T_dec, B, V_PAD)


# ---------------------------------------------------------------------------
# Plain-JAX glue
# ---------------------------------------------------------------------------
def multi_embed(tokens, emb_tables):
    # tokens: (B, T, F) int32; emb_tables: list of (V_f, E_f) f32
    parts = [jnp.take(tbl, tokens[..., i], axis=0)
             for i, tbl in enumerate(emb_tables)]
    return jnp.concatenate(parts, axis=-1)


def _pad_to(x, shape):
    pads = [(0, s - d) for d, s in zip(x.shape, shape)]
    return jnp.pad(x, pads)


def _pack_gru_slab(w_ih, w_hh, b_ih, b_hh):
    """Pack stacked (3,E,H)/(3,H,H)/(3,1,H) GRU params into one lane-dense
    (GRU_SLAB_ROWS, 128) slab.  Gate g occupies lanes [g*H : (g+1)*H]; all
    padding is exactly zero."""
    E, H = w_ih.shape[1], w_ih.shape[2]
    slab = jnp.zeros((GRU_SLAB_ROWS, H_PAD), jnp.float32)
    for g in range(3):
        c = g * H
        slab = slab.at[W_IH_ROW:W_IH_ROW + E, c:c + H].set(w_ih[g])
        slab = slab.at[W_HH_ROW:W_HH_ROW + H, c:c + H].set(w_hh[g])
        slab = slab.at[B_IH_ROW, c:c + H].set(b_ih[g, 0])
        slab = slab.at[B_HH_ROW, c:c + H].set(b_hh[g, 0])
    return slab


def prepack_params(params):
    """Run ONCE outside the per-call graph: pad/pack weights into 3 slabs."""
    proj_slab = jnp.zeros((PROJ_SLAB_ROWS, V_PAD), jnp.float32)
    proj_slab = proj_slab.at[0:HIDDEN, 0:OUT_VOCAB].set(params['proj_w'])
    proj_slab = proj_slab.at[PROJ_B_ROW, 0:OUT_VOCAB].set(params['proj_b'][0])
    return {
        'enc_emb': params['enc_emb'],
        'dec_emb': params['dec_emb'],
        'enc_slab': _pack_gru_slab(*params['enc_gru']),
        'dec_slab': _pack_gru_slab(*params['dec_gru']),
        'proj_slab': proj_slab,
    }


# ---------------------------------------------------------------------------
# Parameter construction (deterministic, synthetic)
# ---------------------------------------------------------------------------
def _uniform(key, shape, scale):
    return jax.random.uniform(key, shape, jnp.float32, -scale, scale)


def make_params(key):
    vocabs = list(VOCAB_SIZE_DICT.values())
    E = EMB_SIZE * len(vocabs)
    keys = iter(jax.random.split(key, 64))

    def make_emb():
        return [_uniform(next(keys), (v, EMB_SIZE), 0.1) for v in vocabs]

    def make_gru(in_dim):
        s = 1.0 / jnp.sqrt(HIDDEN)
        return (_uniform(next(keys), (3, in_dim, HIDDEN), s),   # W_ih (r,z,n)
                _uniform(next(keys), (3, HIDDEN, HIDDEN), s),   # W_hh
                _uniform(next(keys), (3, 1, HIDDEN), s),        # b_ih
                _uniform(next(keys), (3, 1, HIDDEN), s))        # b_hh

    return {
        'enc_emb': make_emb(),
        'dec_emb': make_emb(),
        'enc_gru': make_gru(E),
        'dec_gru': make_gru(E),
        'proj_w': _uniform(next(keys), (HIDDEN, OUT_VOCAB), 1.0 / jnp.sqrt(HIDDEN)),
        'proj_b': _uniform(next(keys), (1, OUT_VOCAB), 1.0 / jnp.sqrt(HIDDEN)),
    }


# ---------------------------------------------------------------------------
# Seq2seq forward: enc_out, h = encoder(src); dec_out = decoder(tgt, h)
# ---------------------------------------------------------------------------
@jax.jit
def seq2seq_forward(packed, src, tgt):
    B, T_src, _ = src.shape
    T_tgt = tgt.shape[1]

    # Per-feature embedding gather (plain JAX; 5 tiny tables).
    src_emb = multi_embed(src, packed['enc_emb']).astype(jnp.float32)   # (B,Ts,40)
    tgt_emb = multi_embed(tgt, packed['dec_emb']).astype(jnp.float32)   # (B,Tt,40)

    # Time-major + (8,128)-padding of the activations only (weights pre-packed).
    def prep(emb, T):
        x = jnp.transpose(emb, (1, 0, 2))                   # (T, B, E)
        return _pad_to(x, (T, B_PAD, E_PAD))

    x_enc = prep(src_emb, T_src)
    x_dec = prep(tgt_emb, T_tgt)

    vmem = lambda: pl.BlockSpec(memory_space=pltpu.MemorySpace.VMEM)

    # Single fused kernel: whole problem (< 1 MiB) is VMEM-resident, one launch.
    logits_pad = pl.pallas_call(
        _seq2seq_fused_kernel,
        out_shape=jax.ShapeDtypeStruct((T_tgt, B_PAD, V_PAD), jnp.float32),
        in_specs=[vmem() for _ in range(5)],
        out_specs=vmem(),
    )(x_enc, x_dec, packed['enc_slab'], packed['dec_slab'], packed['proj_slab'])

    logits = jnp.transpose(logits_pad, (1, 0, 2))[:B, :, :OUT_VOCAB]
    return logits


# ---------------------------------------------------------------------------
# Pure-JAX reference (correctness sanity check)
# ---------------------------------------------------------------------------
def _gru_ref(x_tbe, w_ih, w_hh, b_ih, b_hh, h0):
    def step(h, x):
        r = jax.nn.sigmoid(x @ w_ih[0] + b_ih[0] + h @ w_hh[0] + b_hh[0])
        z = jax.nn.sigmoid(x @ w_ih[1] + b_ih[1] + h @ w_hh[1] + b_hh[1])
        n = jnp.tanh(x @ w_ih[2] + b_ih[2] + r * (h @ w_hh[2] + b_hh[2]))
        h_new = (1.0 - z) * n + z * h
        return h_new, h_new
    h_last, outs = jax.lax.scan(step, h0, x_tbe)
    return outs, h_last


def seq2seq_ref(params, src, tgt):
    B = src.shape[0]
    x_enc = jnp.transpose(multi_embed(src, params['enc_emb']), (1, 0, 2))
    _, h_enc = _gru_ref(x_enc, *params['enc_gru'],
                        jnp.zeros((B, HIDDEN), jnp.float32))
    x_dec = jnp.transpose(multi_embed(tgt, params['dec_emb']), (1, 0, 2))
    dec_seq, _ = _gru_ref(x_dec, *params['dec_gru'], h_enc)
    dec_hidden = jnp.transpose(dec_seq, (1, 0, 2))
    Bt, Tt, H = dec_hidden.shape
    logits = dec_hidden.reshape(Bt * Tt, H) @ params['proj_w'] + params['proj_b']
    return logits.reshape(Bt, Tt, OUT_VOCAB)


# ---------------------------------------------------------------------------
if __name__ == "__main__":
    key = jax.random.PRNGKey(0)
    k_par, k_src, k_tgt = jax.random.split(key, 3)

    B, T_SRC, T_TGT = 2, 8, 8
    vocabs = jnp.array(list(VOCAB_SIZE_DICT.values()), dtype=jnp.int32)
    F = len(VOCAB_SIZE_DICT)

    params = make_params(k_par)
    packed = jax.block_until_ready(prepack_params(params))   # pack ONCE

    src = (jax.random.randint(k_src, (B, T_SRC, F), 0, 1_000_000) % vocabs).astype(jnp.int32)
    tgt = (jax.random.randint(k_tgt, (B, T_TGT, F), 0, 1_000_000) % vocabs).astype(jnp.int32)

    dec_out = seq2seq_forward(packed, src, tgt)
    dec_out = jax.block_until_ready(dec_out)

    with jax.default_matmul_precision("highest"):
        ref_out = seq2seq_ref(params, src, tgt)

    assert dec_out.shape == (B, T_TGT, OUT_VOCAB)
    assert jnp.allclose(dec_out, ref_out, atol=1e-3, rtol=1e-3)

    print("KERNEL_OK")
</pallas_src>

<mosaic_0001>
module attributes {stable_mosaic.version = 11 : i64} {
  func.func @_seq2seq_fused_kernel(%arg0: memref<8x8x128xf32, #tpu.memory_space<vmem>>, %arg1: memref<8x8x128xf32, #tpu.memory_space<vmem>>, %arg2: memref<272x128xf32, #tpu.memory_space<vmem>>, %arg3: memref<272x128xf32, #tpu.memory_space<vmem>>, %arg4: memref<136x128xf32, #tpu.memory_space<vmem>>, %arg5: memref<8x8x128xf32, #tpu.memory_space<vmem>>) attributes {dimension_semantics = [], scalar_prefetch = 0 : i64, scratch_operands = 0 : i64, tpu.core_type = #tpu.core_type<tc>} {
    %cst = arith.constant 0.000000e+00 : f32
    %0 = vector.broadcast %cst : f32 to vector<8x96xf32>
    %cst_0 = arith.constant 0.000000e+00 : f32
    %1 = vector.broadcast %cst_0 : f32 to vector<8x128xf32>
    %c0 = arith.constant 0 : index
    %c0_1 = arith.constant 0 : index
    %2 = vector.load %arg2[%c0, %c0_1] : memref<272x128xf32, #tpu.memory_space<vmem>>, vector<128x128xf32>
    %c128 = arith.constant 128 : index
    %c0_2 = arith.constant 0 : index
    %3 = vector.load %arg2[%c128, %c0_2] : memref<272x128xf32, #tpu.memory_space<vmem>>, vector<128x128xf32>
    %c256 = arith.constant 256 : index
    %c0_3 = arith.constant 0 : index
    %4 = vector.load %arg2[%c256, %c0_3] : memref<272x128xf32, #tpu.memory_space<vmem>>, vector<1x128xf32>
    %c264 = arith.constant 264 : index
    %c0_4 = arith.constant 0 : index
    %5 = vector.load %arg2[%c264, %c0_4] : memref<272x128xf32, #tpu.memory_space<vmem>>, vector<1x128xf32>
    %c0_5 = arith.constant 0 : index
    %c0_6 = arith.constant 0 : index
    %c0_7 = arith.constant 0 : index
    %6 = vector.load %arg0[%c0_5, %c0_6, %c0_7] : memref<8x8x128xf32, #tpu.memory_space<vmem>>, vector<8x8x128xf32>
    %7 = vector.shape_cast %6 : vector<8x8x128xf32> to vector<64x128xf32>
    %cst_8 = arith.constant dense<0.000000e+00> : vector<64x128xf32>
    %8 = tpu.matmul %7, %2, %cst_8 {dimension_numbers = #tpu.dot_dimension_numbers<[1], [0], [0], [1], [0, 0, 1, 1], [], []>} : vector<64x128xf32>, vector<128x128xf32>, vector<64x128xf32> -> vector<64x128xf32>
    %9 = vector.broadcast %4 : vector<1x128xf32> to vector<64x128xf32>
    %10 = arith.addf %8, %9 : vector<64x128xf32>
    %11 = vector.shape_cast %10 : vector<64x128xf32> to vector<8x8x128xf32>
    %12 = vector.extract_strided_slice %11 {offsets = [0, 0, 0], sizes = [1, 8, 128], strides = [1, 1, 1]} : vector<8x8x128xf32> to vector<1x8x128xf32>
    %13 = vector.shape_cast %12 : vector<1x8x128xf32> to vector<8x128xf32>
    %cst_9 = arith.constant dense<0.000000e+00> : vector<8x128xf32>
    %14 = tpu.matmul %1, %3, %cst_9 {dimension_numbers = #tpu.dot_dimension_numbers<[1], [0], [0], [1], [0, 0, 1, 1], [], []>} : vector<8x128xf32>, vector<128x128xf32>, vector<8x128xf32> -> vector<8x128xf32>
    %15 = vector.broadcast %5 : vector<1x128xf32> to vector<8x128xf32>
    %16 = arith.addf %14, %15 : vector<8x128xf32>
    %17 = arith.addf %13, %16 : vector<8x128xf32>
    %18 = vector.extract_strided_slice %17 {offsets = [0, 0], sizes = [8, 32], strides = [1, 1]} : vector<8x128xf32> to vector<8x32xf32>
    %19 = arith.negf %18 : vector<8x32xf32>
    %20 = math.exp %19 : vector<8x32xf32>
    %cst_10 = arith.constant 1.000000e+00 : f32
    %21 = vector.broadcast %cst_10 : f32 to vector<8x32xf32>
    %22 = arith.addf %21, %20 : vector<8x32xf32>
    %23 = arith.divf %21, %22 : vector<8x32xf32>
    %24 = vector.extract_strided_slice %17 {offsets = [0, 32], sizes = [8, 32], strides = [1, 1]} : vector<8x128xf32> to vector<8x32xf32>
    %25 = arith.negf %24 : vector<8x32xf32>
    %26 = math.exp %25 : vector<8x32xf32>
    %cst_11 = arith.constant 1.000000e+00 : f32
    %27 = vector.broadcast %cst_11 : f32 to vector<8x32xf32>
    %28 = arith.addf %27, %26 : vector<8x32xf32>
    %29 = arith.divf %27, %28 : vector<8x32xf32>
    %30 = vector.extract_strided_slice %13 {offsets = [0, 64], sizes = [8, 32], strides = [1, 1]} : vector<8x128xf32> to vector<8x32xf32>
    %31 = vector.extract_strided_slice %16 {offsets = [0, 64], sizes = [8, 32], strides = [1, 1]} : vector<8x128xf32> to vector<8x32xf32>
    %32 = arith.mulf %23, %31 : vector<8x32xf32>
    %33 = arith.addf %30, %32 : vector<8x32xf32>
    %34 = math.tanh %33 : vector<8x32xf32>
    %cst_12 = arith.constant 1.000000e+00 : f32
    %35 = vector.broadcast %cst_12 : f32 to vector<8x32xf32>
    %36 = arith.subf %35, %29 : vector<8x32xf32>
    %37 = arith.mulf %36, %34 : vector<8x32xf32>
    %38 = vector.extract_strided_slice %1 {offsets = [0, 0], sizes = [8, 32], strides = [1, 1]} : vector<8x128xf32> to vector<8x32xf32>
    %39 = arith.mulf %29, %38 : vector<8x32xf32>
    %40 = arith.addf %37, %39 : vector<8x32xf32>
    %41 = tpu.concatenate %40, %0 in 1 : vector<8x32xf32>, vector<8x96xf32> -> vector<8x128xf32>
    %42 = vector.extract_strided_slice %11 {offsets = [1, 0, 0], sizes = [1, 8, 128], strides = [1, 1, 1]} : vector<8x8x128xf32> to vector<1x8x128xf32>
    %43 = vector.shape_cast %42 : vector<1x8x128xf32> to vector<8x128xf32>
    %cst_13 = arith.constant dense<0.000000e+00> : vector<8x128xf32>
    %44 = tpu.matmul %41, %3, %cst_13 {dimension_numbers = #tpu.dot_dimension_numbers<[1], [0], [0], [1], [0, 0, 1, 1], [], []>} : vector<8x128xf32>, vector<128x128xf32>, vector<8x128xf32> -> vector<8x128xf32>
    %45 = vector.broadcast %5 : vector<1x128xf32> to vector<8x128xf32>
    %46 = arith.addf %44, %45 : vector<8x128xf32>
    %47 = arith.addf %43, %46 : vector<8x128xf32>
    %48 = vector.extract_strided_slice %47 {offsets = [0, 0], sizes = [8, 32], strides = [1, 1]} : vector<8x128xf32> to vector<8x32xf32>
    %49 = arith.negf %48 : vector<8x32xf32>
    %50 = math.exp %49 : vector<8x32xf32>
    %cst_14 = arith.constant 1.000000e+00 : f32
    %51 = vector.broadcast %cst_14 : f32 to vector<8x32xf32>
    %52 = arith.addf %51, %50 : vector<8x32xf32>
    %53 = arith.divf %51, %52 : vector<8x32xf32>
    %54 = vector.extract_strided_slice %47 {offsets = [0, 32], sizes = [8, 32], strides = [1, 1]} : vector<8x128xf32> to vector<8x32xf32>
    %55 = arith.negf %54 : vector<8x32xf32>
    %56 = math.exp %55 : vector<8x32xf32>
    %cst_15 = arith.constant 1.000000e+00 : f32
    %57 = vector.broadcast %cst_15 : f32 to vector<8x32xf32>
    %58 = arith.addf %57, %56 : vector<8x32xf32>
    %59 = arith.divf %57, %58 : vector<8x32xf32>
    %60 = vector.extract_strided_slice %43 {offsets = [0, 64], sizes = [8, 32], strides = [1, 1]} : vector<8x128xf32> to vector<8x32xf32>
    %61 = vector.extract_strided_slice %46 {offsets = [0, 64], sizes = [8, 32], strides = [1, 1]} : vector<8x128xf32> to vector<8x32xf32>
    %62 = arith.mulf %53, %61 : vector<8x32xf32>
    %63 = arith.addf %60, %62 : vector<8x32xf32>
    %64 = math.tanh %63 : vector<8x32xf32>
    %cst_16 = arith.constant 1.000000e+00 : f32
    %65 = vector.broadcast %cst_16 : f32 to vector<8x32xf32>
    %66 = arith.subf %65, %59 : vector<8x32xf32>
    %67 = arith.mulf %66, %64 : vector<8x32xf32>
    %68 = vector.extract_strided_slice %41 {offsets = [0, 0], sizes = [8, 32], strides = [1, 1]} : vector<8x128xf32> to vector<8x32xf32>
    %69 = arith.mulf %59, %68 : vector<8x32xf32>
    %70 = arith.addf %67, %69 : vector<8x32xf32>
    %71 = tpu.concatenate %70, %0 in 1 : vector<8x32xf32>, vector<8x96xf32> -> vector<8x128xf32>
    %72 = vector.extract_strided_slice %11 {offsets = [2, 0, 0], sizes = [1, 8, 128], strides = [1, 1, 1]} : vector<8x8x128xf32> to vector<1x8x128xf32>
    %73 = vector.shape_cast %72 : vector<1x8x128xf32> to vector<8x128xf32>
    %cst_17 = arith.constant dense<0.000000e+00> : vector<8x128xf32>
    %74 = tpu.matmul %71, %3, %cst_17 {dimension_numbers = #tpu.dot_dimension_numbers<[1], [0], [0], [1], [0, 0, 1, 1], [], []>} : vector<8x128xf32>, vector<128x128xf32>, vector<8x128xf32> -> vector<8x128xf32>
    %75 = vector.broadcast %5 : vector<1x128xf32> to vector<8x128xf32>
    %76 = arith.addf %74, %75 : vector<8x128xf32>
    %77 = arith.addf %73, %76 : vector<8x128xf32>
    %78 = vector.extract_strided_slice %77 {offsets = [0, 0], sizes = [8, 32], strides = [1, 1]} : vector<8x128xf32> to vector<8x32xf32>
    %79 = arith.negf %78 : vector<8x32xf32>
    %80 = math.exp %79 : vector<8x32xf32>
    %cst_18 = arith.constant 1.000000e+00 : f32
    %81 = vector.broadcast %cst_18 : f32 to vector<8x32xf32>
    %82 = arith.addf %81, %80 : vector<8x32xf32>
    %83 = arith.divf %81, %82 : vector<8x32xf32>
    %84 = vector.extract_strided_slice %77 {offsets = [0, 32], sizes = [8, 32], strides = [1, 1]} : vector<8x128xf32> to vector<8x32xf32>
    %85 = arith.negf %84 : vector<8x32xf32>
    %86 = math.exp %85 : vector<8x32xf32>
    %cst_19 = arith.constant 1.000000e+00 : f32
    %87 = vector.broadcast %cst_19 : f32 to vector<8x32xf32>
    %88 = arith.addf %87, %86 : vector<8x32xf32>
    %89 = arith.divf %87, %88 : vector<8x32xf32>
    %90 = vector.extract_strided_slice %73 {offsets = [0, 64], sizes = [8, 32], strides = [1, 1]} : vector<8x128xf32> to vector<8x32xf32>
    %91 = vector.extract_strided_slice %76 {offsets = [0, 64], sizes = [8, 32], strides = [1, 1]} : vector<8x128xf32> to vector<8x32xf32>
    %92 = arith.mulf %83, %91 : vector<8x32xf32>
    %93 = arith.addf %90, %92 : vector<8x32xf32>
    %94 = math.tanh %93 : vector<8x32xf32>
    %cst_20 = arith.constant 1.000000e+00 : f32
    %95 = vector.broadcast %cst_20 : f32 to vector<8x32xf32>
    %96 = arith.subf %95, %89 : vector<8x32xf32>
    %97 = arith.mulf %96, %94 : vector<8x32xf32>
    %98 = vector.extract_strided_slice %71 {offsets = [0, 0], sizes = [8, 32], strides = [1, 1]} : vector<8x128xf32> to vector<8x32xf32>
    %99 = arith.mulf %89, %98 : vector<8x32xf32>
    %100 = arith.addf %97, %99 : vector<8x32xf32>
    %101 = tpu.concatenate %100, %0 in 1 : vector<8x32xf32>, vector<8x96xf32> -> vector<8x128xf32>
    %102 = vector.extract_strided_slice %11 {offsets = [3, 0, 0], sizes = [1, 8, 128], strides = [1, 1, 1]} : vector<8x8x128xf32> to vector<1x8x128xf32>
    %103 = vector.shape_cast %102 : vector<1x8x128xf32> to vector<8x128xf32>
    %cst_21 = arith.constant dense<0.000000e+00> : vector<8x128xf32>
    %104 = tpu.matmul %101, %3, %cst_21 {dimension_numbers = #tpu.dot_dimension_numbers<[1], [0], [0], [1], [0, 0, 1, 1], [], []>} : vector<8x128xf32>, vector<128x128xf32>, vector<8x128xf32> -> vector<8x128xf32>
    %105 = vector.broadcast %5 : vector<1x128xf32> to vector<8x128xf32>
    %106 = arith.addf %104, %105 : vector<8x128xf32>
    %107 = arith.addf %103, %106 : vector<8x128xf32>
    %108 = vector.extract_strided_slice %107 {offsets = [0, 0], sizes = [8, 32], strides = [1, 1]} : vector<8x128xf32> to vector<8x32xf32>
    %109 = arith.negf %108 : vector<8x32xf32>
    %110 = math.exp %109 : vector<8x32xf32>
    %cst_22 = arith.constant 1.000000e+00 : f32
    %111 = vector.broadcast %cst_22 : f32 to vector<8x32xf32>
    %112 = arith.addf %111, %110 : vector<8x32xf32>
    %113 = arith.divf %111, %112 : vector<8x32xf32>
    %114 = vector.extract_strided_slice %107 {offsets = [0, 32], sizes = [8, 32], strides = [1, 1]} : vector<8x128xf32> to vector<8x32xf32>
    %115 = arith.negf %114 : vector<8x32xf32>
    %116 = math.exp %115 : vector<8x32xf32>
    %cst_23 = arith.constant 1.000000e+00 : f32
    %117 = vector.broadcast %cst_23 : f32 to vector<8x32xf32>
    %118 = arith.addf %117, %116 : vector<8x32xf32>
    %119 = arith.divf %117, %118 : vector<8x32xf32>
    %120 = vector.extract_strided_slice %103 {offsets = [0, 64], sizes = [8, 32], strides = [1, 1]} : vector<8x128xf32> to vector<8x32xf32>
    %121 = vector.extract_strided_slice %106 {offsets = [0, 64], sizes = [8, 32], strides = [1, 1]} : vector<8x128xf32> to vector<8x32xf32>
    %122 = arith.mulf %113, %121 : vector<8x32xf32>
    %123 = arith.addf %120, %122 : vector<8x32xf32>
    %124 = math.tanh %123 : vector<8x32xf32>
    %cst_24 = arith.constant 1.000000e+00 : f32
    %125 = vector.broadcast %cst_24 : f32 to vector<8x32xf32>
    %126 = arith.subf %125, %119 : vector<8x32xf32>
    %127 = arith.mulf %126, %124 : vector<8x32xf32>
    %128 = vector.extract_strided_slice %101 {offsets = [0, 0], sizes = [8, 32], strides = [1, 1]} : vector<8x128xf32> to vector<8x32xf32>
    %129 = arith.mulf %119, %128 : vector<8x32xf32>
    %130 = arith.addf %127, %129 : vector<8x32xf32>
    %131 = tpu.concatenate %130, %0 in 1 : vector<8x32xf32>, vector<8x96xf32> -> vector<8x128xf32>
    %132 = vector.extract_strided_slice %11 {offsets = [4, 0, 0], sizes = [1, 8, 128], strides = [1, 1, 1]} : vector<8x8x128xf32> to vector<1x8x128xf32>
    %133 = vector.shape_cast %132 : vector<1x8x128xf32> to vector<8x128xf32>
    %cst_25 = arith.constant dense<0.000000e+00> : vector<8x128xf32>
    %134 = tpu.matmul %131, %3, %cst_25 {dimension_numbers = #tpu.dot_dimension_numbers<[1], [0], [0], [1], [0, 0, 1, 1], [], []>} : vector<8x128xf32>, vector<128x128xf32>, vector<8x128xf32> -> vector<8x128xf32>
    %135 = vector.broadcast %5 : vector<1x128xf32> to vector<8x128xf32>
    %136 = arith.addf %134, %135 : vector<8x128xf32>
    %137 = arith.addf %133, %136 : vector<8x128xf32>
    %138 = vector.extract_strided_slice %137 {offsets = [0, 0], sizes = [8, 32], strides = [1, 1]} : vector<8x128xf32> to vector<8x32xf32>
    %139 = arith.negf %138 : vector<8x32xf32>
    %140 = math.exp %139 : vector<8x32xf32>
    %cst_26 = arith.constant 1.000000e+00 : f32
    %141 = vector.broadcast %cst_26 : f32 to vector<8x32xf32>
    %142 = arith.addf %141, %140 : vector<8x32xf32>
    %143 = arith.divf %141, %142 : vector<8x32xf32>
    %144 = vector.extract_strided_slice %137 {offsets = [0, 32], sizes = [8, 32], strides = [1, 1]} : vector<8x128xf32> to vector<8x32xf32>
    %145 = arith.negf %144 : vector<8x32xf32>
    %146 = math.exp %145 : vector<8x32xf32>
    %cst_27 = arith.constant 1.000000e+00 : f32
    %147 = vector.broadcast %cst_27 : f32 to vector<8x32xf32>
    %148 = arith.addf %147, %146 : vector<8x32xf32>
    %149 = arith.divf %147, %148 : vector<8x32xf32>
    %150 = vector.extract_strided_slice %133 {offsets = [0, 64], sizes = [8, 32], strides = [1, 1]} : vector<8x128xf32> to vector<8x32xf32>
    %151 = vector.extract_strided_slice %136 {offsets = [0, 64], sizes = [8, 32], strides = [1, 1]} : vector<8x128xf32> to vector<8x32xf32>
    %152 = arith.mulf %143, %151 : vector<8x32xf32>
    %153 = arith.addf %150, %152 : vector<8x32xf32>
    %154 = math.tanh %153 : vector<8x32xf32>
    %cst_28 = arith.constant 1.000000e+00 : f32
    %155 = vector.broadcast %cst_28 : f32 to vector<8x32xf32>
    %156 = arith.subf %155, %149 : vector<8x32xf32>
    %157 = arith.mulf %156, %154 : vector<8x32xf32>
    %158 = vector.extract_strided_slice %131 {offsets = [0, 0], sizes = [8, 32], strides = [1, 1]} : vector<8x128xf32> to vector<8x32xf32>
    %159 = arith.mulf %149, %158 : vector<8x32xf32>
    %160 = arith.addf %157, %159 : vector<8x32xf32>
    %161 = tpu.concatenate %160, %0 in 1 : vector<8x32xf32>, vector<8x96xf32> -> vector<8x128xf32>
    %162 = vector.extract_strided_slice %11 {offsets = [5, 0, 0], sizes = [1, 8, 128], strides = [1, 1, 1]} : vector<8x8x128xf32> to vector<1x8x128xf32>
    %163 = vector.shape_cast %162 : vector<1x8x128xf32> to vector<8x128xf32>
    %cst_29 = arith.constant dense<0.000000e+00> : vector<8x128xf32>
    %164 = tpu.matmul %161, %3, %cst_29 {dimension_numbers = #tpu.dot_dimension_numbers<[1], [0], [0], [1], [0, 0, 1, 1], [], []>} : vector<8x128xf32>, vector<128x128xf32>, vector<8x128xf32> -> vector<8x128xf32>
    %165 = vector.broadcast %5 : vector<1x128xf32> to vector<8x128xf32>
    %166 = arith.addf %164, %165 : vector<8x128xf32>
    %167 = arith.addf %163, %166 : vector<8x128xf32>
    %168 = vector.extract_strided_slice %167 {offsets = [0, 0], sizes = [8, 32], strides = [1, 1]} : vector<8x128xf32> to vector<8x32xf32>
    %169 = arith.negf %168 : vector<8x32xf32>
    %170 = math.exp %169 : vector<8x32xf32>
    %cst_30 = arith.constant 1.000000e+00 : f32
    %171 = vector.broadcast %cst_30 : f32 to vector<8x32xf32>
    %172 = arith.addf %171, %170 : vector<8x32xf32>
    %173 = arith.divf %171, %172 : vector<8x32xf32>
    %174 = vector.extract_strided_slice %167 {offsets = [0, 32], sizes = [8, 32], strides = [1, 1]} : vector<8x128xf32> to vector<8x32xf32>
    %175 = arith.negf %174 : vector<8x32xf32>
    %176 = math.exp %175 : vector<8x32xf32>
    %cst_31 = arith.constant 1.000000e+00 : f32
    %177 = vector.broadcast %cst_31 : f32 to vector<8x32xf32>
    %178 = arith.addf %177, %176 : vector<8x32xf32>
    %179 = arith.divf %177, %178 : vector<8x32xf32>
    %180 = vector.extract_strided_slice %163 {offsets = [0, 64], sizes = [8, 32], strides = [1, 1]} : vector<8x128xf32> to vector<8x32xf32>
    %181 = vector.extract_strided_slice %166 {offsets = [0, 64], sizes = [8, 32], strides = [1, 1]} : vector<8x128xf32> to vector<8x32xf32>
    %182 = arith.mulf %173, %181 : vector<8x32xf32>
    %183 = arith.addf %180, %182 : vector<8x32xf32>
    %184 = math.tanh %183 : vector<8x32xf32>
    %cst_32 = arith.constant 1.000000e+00 : f32
    %185 = vector.broadcast %cst_32 : f32 to vector<8x32xf32>
    %186 = arith.subf %185, %179 : vector<8x32xf32>
    %187 = arith.mulf %186, %184 : vector<8x32xf32>
    %188 = vector.extract_strided_slice %161 {offsets = [0, 0], sizes = [8, 32], strides = [1, 1]} : vector<8x128xf32> to vector<8x32xf32>
    %189 = arith.mulf %179, %188 : vector<8x32xf32>
    %190 = arith.addf %187, %189 : vector<8x32xf32>
    %191 = tpu.concatenate %190, %0 in 1 : vector<8x32xf32>, vector<8x96xf32> -> vector<8x128xf32>
    %192 = vector.extract_strided_slice %11 {offsets = [6, 0, 0], sizes = [1, 8, 128], strides = [1, 1, 1]} : vector<8x8x128xf32> to vector<1x8x128xf32>
    %193 = vector.shape_cast %192 : vector<1x8x128xf32> to vector<8x128xf32>
    %cst_33 = arith.constant dense<0.000000e+00> : vector<8x128xf32>
    %194 = tpu.matmul %191, %3, %cst_33 {dimension_numbers = #tpu.dot_dimension_numbers<[1], [0], [0], [1], [0, 0, 1, 1], [], []>} : vector<8x128xf32>, vector<128x128xf32>, vector<8x128xf32> -> vector<8x128xf32>
    %195 = vector.broadcast %5 : vector<1x128xf32> to vector<8x128xf32>
    %196 = arith.addf %194, %195 : vector<8x128xf32>
    %197 = arith.addf %193, %196 : vector<8x128xf32>
    %198 = vector.extract_strided_slice %197 {offsets = [0, 0], sizes = [8, 32], strides = [1, 1]} : vector<8x128xf32> to vector<8x32xf32>
    %199 = arith.negf %198 : vector<8x32xf32>
    %200 = math.exp %199 : vector<8x32xf32>
    %cst_34 = arith.constant 1.000000e+00 : f32
    %201 = vector.broadcast %cst_34 : f32 to vector<8x32xf32>
    %202 = arith.addf %201, %200 : vector<8x32xf32>
    %203 = arith.divf %201, %202 : vector<8x32xf32>
    %204 = vector.extract_strided_slice %197 {offsets = [0, 32], sizes = [8, 32], strides = [1, 1]} : vector<8x128xf32> to vector<8x32xf32>
    %205 = arith.negf %204 : vector<8x32xf32>
    %206 = math.exp %205 : vector<8x32xf32>
    %cst_35 = arith.constant 1.000000e+00 : f32
    %207 = vector.broadcast %cst_35 : f32 to vector<8x32xf32>
    %208 = arith.addf %207, %206 : vector<8x32xf32>
    %209 = arith.divf %207, %208 : vector<8x32xf32>
    %210 = vector.extract_strided_slice %193 {offsets = [0, 64], sizes = [8, 32], strides = [1, 1]} : vector<8x128xf32> to vector<8x32xf32>
    %211 = vector.extract_strided_slice %196 {offsets = [0, 64], sizes = [8, 32], strides = [1, 1]} : vector<8x128xf32> to vector<8x32xf32>
    %212 = arith.mulf %203, %211 : vector<8x32xf32>
    %213 = arith.addf %210, %212 : vector<8x32xf32>
    %214 = math.tanh %213 : vector<8x32xf32>
    %cst_36 = arith.constant 1.000000e+00 : f32
    %215 = vector.broadcast %cst_36 : f32 to vector<8x32xf32>
    %216 = arith.subf %215, %209 : vector<8x32xf32>
    %217 = arith.mulf %216, %214 : vector<8x32xf32>
    %218 = vector.extract_strided_slice %191 {offsets = [0, 0], sizes = [8, 32], strides = [1, 1]} : vector<8x128xf32> to vector<8x32xf32>
    %219 = arith.mulf %209, %218 : vector<8x32xf32>
    %220 = arith.addf %217, %219 : vector<8x32xf32>
    %221 = tpu.concatenate %220, %0 in 1 : vector<8x32xf32>, vector<8x96xf32> -> vector<8x128xf32>
    %222 = vector.extract_strided_slice %11 {offsets = [7, 0, 0], sizes = [1, 8, 128], strides = [1, 1, 1]} : vector<8x8x128xf32> to vector<1x8x128xf32>
    %223 = vector.shape_cast %222 : vector<1x8x128xf32> to vector<8x128xf32>
    %cst_37 = arith.constant dense<0.000000e+00> : vector<8x128xf32>
    %224 = tpu.matmul %221, %3, %cst_37 {dimension_numbers = #tpu.dot_dimension_numbers<[1], [0], [0], [1], [0, 0, 1, 1], [], []>} : vector<8x128xf32>, vector<128x128xf32>, vector<8x128xf32> -> vector<8x128xf32>
    %225 = vector.broadcast %5 : vector<1x128xf32> to vector<8x128xf32>
    %226 = arith.addf %224, %225 : vector<8x128xf32>
    %227 = arith.addf %223, %226 : vector<8x128xf32>
    %228 = vector.extract_strided_slice %227 {offsets = [0, 0], sizes = [8, 32], strides = [1, 1]} : vector<8x128xf32> to vector<8x32xf32>
    %229 = arith.negf %228 : vector<8x32xf32>
    %230 = math.exp %229 : vector<8x32xf32>
    %cst_38 = arith.constant 1.000000e+00 : f32
    %231 = vector.broadcast %cst_38 : f32 to vector<8x32xf32>
    %232 = arith.addf %231, %230 : vector<8x32xf32>
    %233 = arith.divf %231, %232 : vector<8x32xf32>
    %234 = vector.extract_strided_slice %227 {offsets = [0, 32], sizes = [8, 32], strides = [1, 1]} : vector<8x128xf32> to vector<8x32xf32>
    %235 = arith.negf %234 : vector<8x32xf32>
    %236 = math.exp %235 : vector<8x32xf32>
    %cst_39 = arith.constant 1.000000e+00 : f32
    %237 = vector.broadcast %cst_39 : f32 to vector<8x32xf32>
    %238 = arith.addf %237, %236 : vector<8x32xf32>
    %239 = arith.divf %237, %238 : vector<8x32xf32>
    %240 = vector.extract_strided_slice %223 {offsets = [0, 64], sizes = [8, 32], strides = [1, 1]} : vector<8x128xf32> to vector<8x32xf32>
    %241 = vector.extract_strided_slice %226 {offsets = [0, 64], sizes = [8, 32], strides = [1, 1]} : vector<8x128xf32> to vector<8x32xf32>
    %242 = arith.mulf %233, %241 : vector<8x32xf32>
    %243 = arith.addf %240, %242 : vector<8x32xf32>
    %244 = math.tanh %243 : vector<8x32xf32>
    %cst_40 = arith.constant 1.000000e+00 : f32
    %245 = vector.broadcast %cst_40 : f32 to vector<8x32xf32>
    %246 = arith.subf %245, %239 : vector<8x32xf32>
    %247 = arith.mulf %246, %244 : vector<8x32xf32>
    %248 = vector.extract_strided_slice %221 {offsets = [0, 0], sizes = [8, 32], strides = [1, 1]} : vector<8x128xf32> to vector<8x32xf32>
    %249 = arith.mulf %239, %248 : vector<8x32xf32>
    %250 = arith.addf %247, %249 : vector<8x32xf32>
    %251 = tpu.concatenate %250, %0 in 1 : vector<8x32xf32>, vector<8x96xf32> -> vector<8x128xf32>
    %c0_41 = arith.constant 0 : index
    %c0_42 = arith.constant 0 : index
    %252 = vector.load %arg3[%c0_41, %c0_42] : memref<272x128xf32, #tpu.memory_space<vmem>>, vector<128x128xf32>
    %c128_43 = arith.constant 128 : index
    %c0_44 = arith.constant 0 : index
    %253 = vector.load %arg3[%c128_43, %c0_44] : memref<272x128xf32, #tpu.memory_space<vmem>>, vector<128x128xf32>
    %c256_45 = arith.constant 256 : index
    %c0_46 = arith.constant 0 : index
    %254 = vector.load %arg3[%c256_45, %c0_46] : memref<272x128xf32, #tpu.memory_space<vmem>>, vector<1x128xf32>
    %c264_47 = arith.constant 264 : index
    %c0_48 = arith.constant 0 : index
    %255 = vector.load %arg3[%c264_47, %c0_48] : memref<272x128xf32, #tpu.memory_space<vmem>>, vector<1x128xf32>
    %c0_49 = arith.constant 0 : index
    %c0_50 = arith.constant 0 : index
    %c0_51 = arith.constant 0 : index
    %256 = vector.load %arg1[%c0_49, %c0_50, %c0_51] : memref<8x8x128xf32, #tpu.memory_space<vmem>>, vector<8x8x128xf32>
    %257 = vector.shape_cast %256 : vector<8x8x128xf32> to vector<64x128xf32>
    %cst_52 = arith.constant dense<0.000000e+00> : vector<64x128xf32>
    %258 = tpu.matmul %257, %252, %cst_52 {dimension_numbers = #tpu.dot_dimension_numbers<[1], [0], [0], [1], [0, 0, 1, 1], [], []>} : vector<64x128xf32>, vector<128x128xf32>, vector<64x128xf32> -> vector<64x128xf32>
    %259 = vector.broadcast %254 : vector<1x128xf32> to vector<64x128xf32>
    %260 = arith.addf %258, %259 : vector<64x128xf32>
    %261 = vector.shape_cast %260 : vector<64x128xf32> to vector<8x8x128xf32>
    %262 = vector.extract_strided_slice %261 {offsets = [0, 0, 0], sizes = [1, 8, 128], strides = [1, 1, 1]} : vector<8x8x128xf32> to vector<1x8x128xf32>
    %263 = vector.shape_cast %262 : vector<1x8x128xf32> to vector<8x128xf32>
    %cst_53 = arith.constant dense<0.000000e+00> : vector<8x128xf32>
    %264 = tpu.matmul %251, %253, %cst_53 {dimension_numbers = #tpu.dot_dimension_numbers<[1], [0], [0], [1], [0, 0, 1, 1], [], []>} : vector<8x128xf32>, vector<128x128xf32>, vector<8x128xf32> -> vector<8x128xf32>
    %265 = vector.broadcast %255 : vector<1x128xf32> to vector<8x128xf32>
    %266 = arith.addf %264, %265 : vector<8x128xf32>
    %267 = arith.addf %263, %266 : vector<8x128xf32>
    %268 = vector.extract_strided_slice %267 {offsets = [0, 0], sizes = [8, 32], strides = [1, 1]} : vector<8x128xf32> to vector<8x32xf32>
    %269 = arith.negf %268 : vector<8x32xf32>
    %270 = math.exp %269 : vector<8x32xf32>
    %cst_54 = arith.constant 1.000000e+00 : f32
    %271 = vector.broadcast %cst_54 : f32 to vector<8x32xf32>
    %272 = arith.addf %271, %270 : vector<8x32xf32>
    %273 = arith.divf %271, %272 : vector<8x32xf32>
    %274 = vector.extract_strided_slice %267 {offsets = [0, 32], sizes = [8, 32], strides = [1, 1]} : vector<8x128xf32> to vector<8x32xf32>
    %275 = arith.negf %274 : vector<8x32xf32>
    %276 = math.exp %275 : vector<8x32xf32>
    %cst_55 = arith.constant 1.000000e+00 : f32
    %277 = vector.broadcast %cst_55 : f32 to vector<8x32xf32>
    %278 = arith.addf %277, %276 : vector<8x32xf32>
    %279 = arith.divf %277, %278 : vector<8x32xf32>
    %280 = vector.extract_strided_slice %263 {offsets = [0, 64], sizes = [8, 32], strides = [1, 1]} : vector<8x128xf32> to vector<8x32xf32>
    %281 = vector.extract_strided_slice %266 {offsets = [0, 64], sizes = [8, 32], strides = [1, 1]} : vector<8x128xf32> to vector<8x32xf32>
    %282 = arith.mulf %273, %281 : vector<8x32xf32>
    %283 = arith.addf %280, %282 : vector<8x32xf32>
    %284 = math.tanh %283 : vector<8x32xf32>
    %cst_56 = arith.constant 1.000000e+00 : f32
    %285 = vector.broadcast %cst_56 : f32 to vector<8x32xf32>
    %286 = arith.subf %285, %279 : vector<8x32xf32>
    %287 = arith.mulf %286, %284 : vector<8x32xf32>
    %288 = vector.extract_strided_slice %251 {offsets = [0, 0], sizes = [8, 32], strides = [1, 1]} : vector<8x128xf32> to vector<8x32xf32>
    %289 = arith.mulf %279, %288 : vector<8x32xf32>
    %290 = arith.addf %287, %289 : vector<8x32xf32>
    %291 = tpu.concatenate %290, %0 in 1 : vector<8x32xf32>, vector<8x96xf32> -> vector<8x128xf32>
    %292 = vector.extract_strided_slice %261 {offsets = [1, 0, 0], sizes = [1, 8, 128], strides = [1, 1, 1]} : vector<8x8x128xf32> to vector<1x8x128xf32>
    %293 = vector.shape_cast %292 : vector<1x8x128xf32> to vector<8x128xf32>
    %cst_57 = arith.constant dense<0.000000e+00> : vector<8x128xf32>
    %294 = tpu.matmul %291, %253, %cst_57 {dimension_numbers = #tpu.dot_dimension_numbers<[1], [0], [0], [1], [0, 0, 1, 1], [], []>} : vector<8x128xf32>, vector<128x128xf32>, vector<8x128xf32> -> vector<8x128xf32>
    %295 = vector.broadcast %255 : vector<1x128xf32> to vector<8x128xf32>
    %296 = arith.addf %294, %295 : vector<8x128xf32>
    %297 = arith.addf %293, %296 : vector<8x128xf32>
    %298 = vector.extract_strided_slice %297 {offsets = [0, 0], sizes = [8, 32], strides = [1, 1]} : vector<8x128xf32> to vector<8x32xf32>
    %299 = arith.negf %298 : vector<8x32xf32>
    %300 = math.exp %299 : vector<8x32xf32>
    %cst_58 = arith.constant 1.000000e+00 : f32
    %301 = vector.broadcast %cst_58 : f32 to vector<8x32xf32>
    %302 = arith.addf %301, %300 : vector<8x32xf32>
    %303 = arith.divf %301, %302 : vector<8x32xf32>
    %304 = vector.extract_strided_slice %297 {offsets = [0, 32], sizes = [8, 32], strides = [1, 1]} : vector<8x128xf32> to vector<8x32xf32>
    %305 = arith.negf %304 : vector<8x32xf32>
    %306 = math.exp %305 : vector<8x32xf32>
    %cst_59 = arith.constant 1.000000e+00 : f32
    %307 = vector.broadcast %cst_59 : f32 to vector<8x32xf32>
    %308 = arith.addf %307, %306 : vector<8x32xf32>
    %309 = arith.divf %307, %308 : vector<8x32xf32>
    %310 = vector.extract_strided_slice %293 {offsets = [0, 64], sizes = [8, 32], strides = [1, 1]} : vector<8x128xf32> to vector<8x32xf32>
    %311 = vector.extract_strided_slice %296 {offsets = [0, 64], sizes = [8, 32], strides = [1, 1]} : vector<8x128xf32> to vector<8x32xf32>
    %312 = arith.mulf %303, %311 : vector<8x32xf32>
    %313 = arith.addf %310, %312 : vector<8x32xf32>
    %314 = math.tanh %313 : vector<8x32xf32>
    %cst_60 = arith.constant 1.000000e+00 : f32
    %315 = vector.broadcast %cst_60 : f32 to vector<8x32xf32>
    %316 = arith.subf %315, %309 : vector<8x32xf32>
    %317 = arith.mulf %316, %314 : vector<8x32xf32>
    %318 = vector.extract_strided_slice %291 {offsets = [0, 0], sizes = [8, 32], strides = [1, 1]} : vector<8x128xf32> to vector<8x32xf32>
    %319 = arith.mulf %309, %318 : vector<8x32xf32>
    %320 = arith.addf %317, %319 : vector<8x32xf32>
    %321 = tpu.concatenate %320, %0 in 1 : vector<8x32xf32>, vector<8x96xf32> -> vector<8x128xf32>
    %322 = vector.extract_strided_slice %261 {offsets = [2, 0, 0], sizes = [1, 8, 128], strides = [1, 1, 1]} : vector<8x8x128xf32> to vector<1x8x128xf32>
    %323 = vector.shape_cast %322 : vector<1x8x128xf32> to vector<8x128xf32>
    %cst_61 = arith.constant dense<0.000000e+00> : vector<8x128xf32>
    %324 = tpu.matmul %321, %253, %cst_61 {dimension_numbers = #tpu.dot_dimension_numbers<[1], [0], [0], [1], [0, 0, 1, 1], [], []>} : vector<8x128xf32>, vector<128x128xf32>, vector<8x128xf32> -> vector<8x128xf32>
    %325 = vector.broadcast %255 : vector<1x128xf32> to vector<8x128xf32>
    %326 = arith.addf %324, %325 : vector<8x128xf32>
    %327 = arith.addf %323, %326 : vector<8x128xf32>
    %328 = vector.extract_strided_slice %327 {offsets = [0, 0], sizes = [8, 32], strides = [1, 1]} : vector<8x128xf32> to vector<8x32xf32>
    %329 = arith.negf %328 : vector<8x32xf32>
    %330 = math.exp %329 : vector<8x32xf32>
    %cst_62 = arith.constant 1.000000e+00 : f32
    %331 = vector.broadcast %cst_62 : f32 to vector<8x32xf32>
    %332 = arith.addf %331, %330 : vector<8x32xf32>
    %333 = arith.divf %331, %332 : vector<8x32xf32>
    %334 = vector.extract_strided_slice %327 {offsets = [0, 32], sizes = [8, 32], strides = [1, 1]} : vector<8x128xf32> to vector<8x32xf32>
    %335 = arith.negf %334 : vector<8x32xf32>
    %336 = math.exp %335 : vector<8x32xf32>
    %cst_63 = arith.constant 1.000000e+00 : f32
    %337 = vector.broadcast %cst_63 : f32 to vector<8x32xf32>
    %338 = arith.addf %337, %336 : vector<8x32xf32>
    %339 = arith.divf %337, %338 : vector<8x32xf32>
    %340 = vector.extract_strided_slice %323 {offsets = [0, 64], sizes = [8, 32], strides = [1, 1]} : vector<8x128xf32> to vector<8x32xf32>
    %341 = vector.extract_strided_slice %326 {offsets = [0, 64], sizes = [8, 32], strides = [1, 1]} : vector<8x128xf32> to vector<8x32xf32>
    %342 = arith.mulf %333, %341 : vector<8x32xf32>
    %343 = arith.addf %340, %342 : vector<8x32xf32>
    %344 = math.tanh %343 : vector<8x32xf32>
    %cst_64 = arith.constant 1.000000e+00 : f32
    %345 = vector.broadcast %cst_64 : f32 to vector<8x32xf32>
    %346 = arith.subf %345, %339 : vector<8x32xf32>
    %347 = arith.mulf %346, %344 : vector<8x32xf32>
    %348 = vector.extract_strided_slice %321 {offsets = [0, 0], sizes = [8, 32], strides = [1, 1]} : vector<8x128xf32> to vector<8x32xf32>
    %349 = arith.mulf %339, %348 : vector<8x32xf32>
    %350 = arith.addf %347, %349 : vector<8x32xf32>
    %351 = tpu.concatenate %350, %0 in 1 : vector<8x32xf32>, vector<8x96xf32> -> vector<8x128xf32>
    %352 = vector.extract_strided_slice %261 {offsets = [3, 0, 0], sizes = [1, 8, 128], strides = [1, 1, 1]} : vector<8x8x128xf32> to vector<1x8x128xf32>
    %353 = vector.shape_cast %352 : vector<1x8x128xf32> to vector<8x128xf32>
    %cst_65 = arith.constant dense<0.000000e+00> : vector<8x128xf32>
    %354 = tpu.matmul %351, %253, %cst_65 {dimension_numbers = #tpu.dot_dimension_numbers<[1], [0], [0], [1], [0, 0, 1, 1], [], []>} : vector<8x128xf32>, vector<128x128xf32>, vector<8x128xf32> -> vector<8x128xf32>
    %355 = vector.broadcast %255 : vector<1x128xf32> to vector<8x128xf32>
    %356 = arith.addf %354, %355 : vector<8x128xf32>
    %357 = arith.addf %353, %356 : vector<8x128xf32>
    %358 = vector.extract_strided_slice %357 {offsets = [0, 0], sizes = [8, 32], strides = [1, 1]} : vector<8x128xf32> to vector<8x32xf32>
    %359 = arith.negf %358 : vector<8x32xf32>
    %360 = math.exp %359 : vector<8x32xf32>
    %cst_66 = arith.constant 1.000000e+00 : f32
    %361 = vector.broadcast %cst_66 : f32 to vector<8x32xf32>
    %362 = arith.addf %361, %360 : vector<8x32xf32>
    %363 = arith.divf %361, %362 : vector<8x32xf32>
    %364 = vector.extract_strided_slice %357 {offsets = [0, 32], sizes = [8, 32], strides = [1, 1]} : vector<8x128xf32> to vector<8x32xf32>
    %365 = arith.negf %364 : vector<8x32xf32>
    %366 = math.exp %365 : vector<8x32xf32>
    %cst_67 = arith.constant 1.000000e+00 : f32
    %367 = vector.broadcast %cst_67 : f32 to vector<8x32xf32>
    %368 = arith.addf %367, %366 : vector<8x32xf32>
    %369 = arith.divf %367, %368 : vector<8x32xf32>
    %370 = vector.extract_strided_slice %353 {offsets = [0, 64], sizes = [8, 32], strides = [1, 1]} : vector<8x128xf32> to vector<8x32xf32>
    %371 = vector.extract_strided_slice %356 {offsets = [0, 64], sizes = [8, 32], strides = [1, 1]} : vector<8x128xf32> to vector<8x32xf32>
    %372 = arith.mulf %363, %371 : vector<8x32xf32>
    %373 = arith.addf %370, %372 : vector<8x32xf32>
    %374 = math.tanh %373 : vector<8x32xf32>
    %cst_68 = arith.constant 1.000000e+00 : f32
    %375 = vector.broadcast %cst_68 : f32 to vector<8x32xf32>
    %376 = arith.subf %375, %369 : vector<8x32xf32>
    %377 = arith.mulf %376, %374 : vector<8x32xf32>
    %378 = vector.extract_strided_slice %351 {offsets = [0, 0], sizes = [8, 32], strides = [1, 1]} : vector<8x128xf32> to vector<8x32xf32>
    %379 = arith.mulf %369, %378 : vector<8x32xf32>
    %380 = arith.addf %377, %379 : vector<8x32xf32>
    %381 = tpu.concatenate %380, %0 in 1 : vector<8x32xf32>, vector<8x96xf32> -> vector<8x128xf32>
    %382 = vector.extract_strided_slice %261 {offsets = [4, 0, 0], sizes = [1, 8, 128], strides = [1, 1, 1]} : vector<8x8x128xf32> to vector<1x8x128xf32>
    %383 = vector.shape_cast %382 : vector<1x8x128xf32> to vector<8x128xf32>
    %cst_69 = arith.constant dense<0.000000e+00> : vector<8x128xf32>
    %384 = tpu.matmul %381, %253, %cst_69 {dimension_numbers = #tpu.dot_dimension_numbers<[1], [0], [0], [1], [0, 0, 1, 1], [], []>} : vector<8x128xf32>, vector<128x128xf32>, vector<8x128xf32> -> vector<8x128xf32>
    %385 = vector.broadcast %255 : vector<1x128xf32> to vector<8x128xf32>
    %386 = arith.addf %384, %385 : vector<8x128xf32>
    %387 = arith.addf %383, %386 : vector<8x128xf32>
    %388 = vector.extract_strided_slice %387 {offsets = [0, 0], sizes = [8, 32], strides = [1, 1]} : vector<8x128xf32> to vector<8x32xf32>
    %389 = arith.negf %388 : vector<8x32xf32>
    %390 = math.exp %389 : vector<8x32xf32>
    %cst_70 = arith.constant 1.000000e+00 : f32
    %391 = vector.broadcast %cst_70 : f32 to vector<8x32xf32>
    %392 = arith.addf %391, %390 : vector<8x32xf32>
    %393 = arith.divf %391, %392 : vector<8x32xf32>
    %394 = vector.extract_strided_slice %387 {offsets = [0, 32], sizes = [8, 32], strides = [1, 1]} : vector<8x128xf32> to vector<8x32xf32>
    %395 = arith.negf %394 : vector<8x32xf32>
    %396 = math.exp %395 : vector<8x32xf32>
    %cst_71 = arith.constant 1.000000e+00 : f32
    %397 = vector.broadcast %cst_71 : f32 to vector<8x32xf32>
    %398 = arith.addf %397, %396 : vector<8x32xf32>
    %399 = arith.divf %397, %398 : vector<8x32xf32>
    %400 = vector.extract_strided_slice %383 {offsets = [0, 64], sizes = [8, 32], strides = [1, 1]} : vector<8x128xf32> to vector<8x32xf32>
    %401 = vector.extract_strided_slice %386 {offsets = [0, 64], sizes = [8, 32], strides = [1, 1]} : vector<8x128xf32> to vector<8x32xf32>
    %402 = arith.mulf %393, %401 : vector<8x32xf32>
    %403 = arith.addf %400, %402 : vector<8x32xf32>
    %404 = math.tanh %403 : vector<8x32xf32>
    %cst_72 = arith.constant 1.000000e+00 : f32
    %405 = vector.broadcast %cst_72 : f32 to vector<8x32xf32>
    %406 = arith.subf %405, %399 : vector<8x32xf32>
    %407 = arith.mulf %406, %404 : vector<8x32xf32>
    %408 = vector.extract_strided_slice %381 {offsets = [0, 0], sizes = [8, 32], strides = [1, 1]} : vector<8x128xf32> to vector<8x32xf32>
    %409 = arith.mulf %399, %408 : vector<8x32xf32>
    %410 = arith.addf %407, %409 : vector<8x32xf32>
    %411 = tpu.concatenate %410, %0 in 1 : vector<8x32xf32>, vector<8x96xf32> -> vector<8x128xf32>
    %412 = vector.extract_strided_slice %261 {offsets = [5, 0, 0], sizes = [1, 8, 128], strides = [1, 1, 1]} : vector<8x8x128xf32> to vector<1x8x128xf32>
    %413 = vector.shape_cast %412 : vector<1x8x128xf32> to vector<8x128xf32>
    %cst_73 = arith.constant dense<0.000000e+00> : vector<8x128xf32>
    %414 = tpu.matmul %411, %253, %cst_73 {dimension_numbers = #tpu.dot_dimension_numbers<[1], [0], [0], [1], [0, 0, 1, 1], [], []>} : vector<8x128xf32>, vector<128x128xf32>, vector<8x128xf32> -> vector<8x128xf32>
    %415 = vector.broadcast %255 : vector<1x128xf32> to vector<8x128xf32>
    %416 = arith.addf %414, %415 : vector<8x128xf32>
    %417 = arith.addf %413, %416 : vector<8x128xf32>
    %418 = vector.extract_strided_slice %417 {offsets = [0, 0], sizes = [8, 32], strides = [1, 1]} : vector<8x128xf32> to vector<8x32xf32>
    %419 = arith.negf %418 : vector<8x32xf32>
    %420 = math.exp %419 : vector<8x32xf32>
    %cst_74 = arith.constant 1.000000e+00 : f32
    %421 = vector.broadcast %cst_74 : f32 to vector<8x32xf32>
    %422 = arith.addf %421, %420 : vector<8x32xf32>
    %423 = arith.divf %421, %422 : vector<8x32xf32>
    %424 = vector.extract_strided_slice %417 {offsets = [0, 32], sizes = [8, 32], strides = [1, 1]} : vector<8x128xf32> to vector<8x32xf32>
    %425 = arith.negf %424 : vector<8x32xf32>
    %426 = math.exp %425 : vector<8x32xf32>
    %cst_75 = arith.constant 1.000000e+00 : f32
    %427 = vector.broadcast %cst_75 : f32 to vector<8x32xf32>
    %428 = arith.addf %427, %426 : vector<8x32xf32>
    %429 = arith.divf %427, %428 : vector<8x32xf32>
    %430 = vector.extract_strided_slice %413 {offsets = [0, 64], sizes = [8, 32], strides = [1, 1]} : vector<8x128xf32> to vector<8x32xf32>
    %431 = vector.extract_strided_slice %416 {offsets = [0, 64], sizes = [8, 32], strides = [1, 1]} : vector<8x128xf32> to vector<8x32xf32>
    %432 = arith.mulf %423, %431 : vector<8x32xf32>
    %433 = arith.addf %430, %432 : vector<8x32xf32>
    %434 = math.tanh %433 : vector<8x32xf32>
    %cst_76 = arith.constant 1.000000e+00 : f32
    %435 = vector.broadcast %cst_76 : f32 to vector<8x32xf32>
    %436 = arith.subf %435, %429 : vector<8x32xf32>
    %437 = arith.mulf %436, %434 : vector<8x32xf32>
    %438 = vector.extract_strided_slice %411 {offsets = [0, 0], sizes = [8, 32], strides = [1, 1]} : vector<8x128xf32> to vector<8x32xf32>
    %439 = arith.mulf %429, %438 : vector<8x32xf32>
    %440 = arith.addf %437, %439 : vector<8x32xf32>
    %441 = tpu.concatenate %440, %0 in 1 : vector<8x32xf32>, vector<8x96xf32> -> vector<8x128xf32>
    %442 = vector.extract_strided_slice %261 {offsets = [6, 0, 0], sizes = [1, 8, 128], strides = [1, 1, 1]} : vector<8x8x128xf32> to vector<1x8x128xf32>
    %443 = vector.shape_cast %442 : vector<1x8x128xf32> to vector<8x128xf32>
    %cst_77 = arith.constant dense<0.000000e+00> : vector<8x128xf32>
    %444 = tpu.matmul %441, %253, %cst_77 {dimension_numbers = #tpu.dot_dimension_numbers<[1], [0], [0], [1], [0, 0, 1, 1], [], []>} : vector<8x128xf32>, vector<128x128xf32>, vector<8x128xf32> -> vector<8x128xf32>
    %445 = vector.broadcast %255 : vector<1x128xf32> to vector<8x128xf32>
    %446 = arith.addf %444, %445 : vector<8x128xf32>
    %447 = arith.addf %443, %446 : vector<8x128xf32>
    %448 = vector.extract_strided_slice %447 {offsets = [0, 0], sizes = [8, 32], strides = [1, 1]} : vector<8x128xf32> to vector<8x32xf32>
    %449 = arith.negf %448 : vector<8x32xf32>
    %450 = math.exp %449 : vector<8x32xf32>
    %cst_78 = arith.constant 1.000000e+00 : f32
    %451 = vector.broadcast %cst_78 : f32 to vector<8x32xf32>
    %452 = arith.addf %451, %450 : vector<8x32xf32>
    %453 = arith.divf %451, %452 : vector<8x32xf32>
    %454 = vector.extract_strided_slice %447 {offsets = [0, 32], sizes = [8, 32], strides = [1, 1]} : vector<8x128xf32> to vector<8x32xf32>
    %455 = arith.negf %454 : vector<8x32xf32>
    %456 = math.exp %455 : vector<8x32xf32>
    %cst_79 = arith.constant 1.000000e+00 : f32
    %457 = vector.broadcast %cst_79 : f32 to vector<8x32xf32>
    %458 = arith.addf %457, %456 : vector<8x32xf32>
    %459 = arith.divf %457, %458 : vector<8x32xf32>
    %460 = vector.extract_strided_slice %443 {offsets = [0, 64], sizes = [8, 32], strides = [1, 1]} : vector<8x128xf32> to vector<8x32xf32>
    %461 = vector.extract_strided_slice %446 {offsets = [0, 64], sizes = [8, 32], strides = [1, 1]} : vector<8x128xf32> to vector<8x32xf32>
    %462 = arith.mulf %453, %461 : vector<8x32xf32>
    %463 = arith.addf %460, %462 : vector<8x32xf32>
    %464 = math.tanh %463 : vector<8x32xf32>
    %cst_80 = arith.constant 1.000000e+00 : f32
    %465 = vector.broadcast %cst_80 : f32 to vector<8x32xf32>
    %466 = arith.subf %465, %459 : vector<8x32xf32>
    %467 = arith.mulf %466, %464 : vector<8x32xf32>
    %468 = vector.extract_strided_slice %441 {offsets = [0, 0], sizes = [8, 32], strides = [1, 1]} : vector<8x128xf32> to vector<8x32xf32>
    %469 = arith.mulf %459, %468 : vector<8x32xf32>
    %470 = arith.addf %467, %469 : vector<8x32xf32>
    %471 = tpu.concatenate %470, %0 in 1 : vector<8x32xf32>, vector<8x96xf32> -> vector<8x128xf32>
    %472 = vector.extract_strided_slice %261 {offsets = [7, 0, 0], sizes = [1, 8, 128], strides = [1, 1, 1]} : vector<8x8x128xf32> to vector<1x8x128xf32>
    %473 = vector.shape_cast %472 : vector<1x8x128xf32> to vector<8x128xf32>
    %cst_81 = arith.constant dense<0.000000e+00> : vector<8x128xf32>
    %474 = tpu.matmul %471, %253, %cst_81 {dimension_numbers = #tpu.dot_dimension_numbers<[1], [0], [0], [1], [0, 0, 1, 1], [], []>} : vector<8x128xf32>, vector<128x128xf32>, vector<8x128xf32> -> vector<8x128xf32>
    %475 = vector.broadcast %255 : vector<1x128xf32> to vector<8x128xf32>
    %476 = arith.addf %474, %475 : vector<8x128xf32>
    %477 = arith.addf %473, %476 : vector<8x128xf32>
    %478 = vector.extract_strided_slice %477 {offsets = [0, 0], sizes = [8, 32], strides = [1, 1]} : vector<8x128xf32> to vector<8x32xf32>
    %479 = arith.negf %478 : vector<8x32xf32>
    %480 = math.exp %479 : vector<8x32xf32>
    %cst_82 = arith.constant 1.000000e+00 : f32
    %481 = vector.broadcast %cst_82 : f32 to vector<8x32xf32>
    %482 = arith.addf %481, %480 : vector<8x32xf32>
    %483 = arith.divf %481, %482 : vector<8x32xf32>
    %484 = vector.extract_strided_slice %477 {offsets = [0, 32], sizes = [8, 32], strides = [1, 1]} : vector<8x128xf32> to vector<8x32xf32>
    %485 = arith.negf %484 : vector<8x32xf32>
    %486 = math.exp %485 : vector<8x32xf32>
    %cst_83 = arith.constant 1.000000e+00 : f32
    %487 = vector.broadcast %cst_83 : f32 to vector<8x32xf32>
    %488 = arith.addf %487, %486 : vector<8x32xf32>
    %489 = arith.divf %487, %488 : vector<8x32xf32>
    %490 = vector.extract_strided_slice %473 {offsets = [0, 64], sizes = [8, 32], strides = [1, 1]} : vector<8x128xf32> to vector<8x32xf32>
    %491 = vector.extract_strided_slice %476 {offsets = [0, 64], sizes = [8, 32], strides = [1, 1]} : vector<8x128xf32> to vector<8x32xf32>
    %492 = arith.mulf %483, %491 : vector<8x32xf32>
    %493 = arith.addf %490, %492 : vector<8x32xf32>
    %494 = math.tanh %493 : vector<8x32xf32>
    %cst_84 = arith.constant 1.000000e+00 : f32
    %495 = vector.broadcast %cst_84 : f32 to vector<8x32xf32>
    %496 = arith.subf %495, %489 : vector<8x32xf32>
    %497 = arith.mulf %496, %494 : vector<8x32xf32>
    %498 = vector.extract_strided_slice %471 {offsets = [0, 0], sizes = [8, 32], strides = [1, 1]} : vector<8x128xf32> to vector<8x32xf32>
    %499 = arith.mulf %489, %498 : vector<8x32xf32>
    %500 = arith.addf %497, %499 : vector<8x32xf32>
    %501 = tpu.concatenate %500, %0 in 1 : vector<8x32xf32>, vector<8x96xf32> -> vector<8x128xf32>
    %502 = tpu.concatenate %291, %321, %351, %381, %411, %441, %471, %501 in 0 : vector<8x128xf32>, vector<8x128xf32>, vector<8x128xf32>, vector<8x128xf32>, vector<8x128xf32>, vector<8x128xf32>, vector<8x128xf32>, vector<8x128xf32> -> vector<64x128xf32>
    %c0_85 = arith.constant 0 : index
    %c0_86 = arith.constant 0 : index
    %503 = vector.load %arg4[%c0_85, %c0_86] : memref<136x128xf32, #tpu.memory_space<vmem>>, vector<128x128xf32>
    %c128_87 = arith.constant 128 : index
    %c0_88 = arith.constant 0 : index
    %504 = vector.load %arg4[%c128_87, %c0_88] : memref<136x128xf32, #tpu.memory_space<vmem>>, vector<1x128xf32>
    %cst_89 = arith.constant dense<0.000000e+00> : vector<64x128xf32>
    %505 = tpu.matmul %502, %503, %cst_89 {dimension_numbers = #tpu.dot_dimension_numbers<[1], [0], [0], [1], [0, 0, 1, 1], [], []>} : vector<64x128xf32>, vector<128x128xf32>, vector<64x128xf32> -> vector<64x128xf32>
    %506 = vector.broadcast %504 : vector<1x128xf32> to vector<64x128xf32>
    %507 = arith.addf %505, %506 : vector<64x128xf32>
    %508 = vector.shape_cast %507 : vector<64x128xf32> to vector<8x8x128xf32>
    %c0_90 = arith.constant 0 : index
    %c0_91 = arith.constant 0 : index
    %c0_92 = arith.constant 0 : index
    %509 = vector.load %arg5[%c0_90, %c0_91, %c0_92] : memref<8x8x128xf32, #tpu.memory_space<vmem>>, vector<8x8x128xf32>
    tpu.vector_store %arg5[%c0_90, %c0_91, %c0_92], %508 {strides = array<i32>} : memref<8x8x128xf32, #tpu.memory_space<vmem>>, vector<8x8x128xf32>,
    return
  }
}

</mosaic_0001>

<bundles_post_ra>
// kernel: seq2seq_forward.1
= control target key start
LH: loop header
LB: loop body
LE: loop exit
PB: predicated region body
PF: predicated region fallthrough
CT: control target
= control target key end

     0   :  { %v3326_v2 = vmov 0.0   ;;  %vm3327_vm0 = vmmov 0   ;;  %s3328_s26 = smov 64   ;;  %vm275_vm1 = vcmask 261120   ;;  %s3330_s27 = smov 32   ;;  %s4538_s2 = inlined_call_operand.vmem [shape: f32[272,128], index: 2, kind: input, shape index: {}]   ;;  %s4539_s0 = inlined_call_operand.vmem [shape: f32[8,8,128], index: 0, kind: input, shape index: {}]   ;;  %s4540_s3 = inlined_call_operand.vmem [shape: f32[272,128], index: 3, kind: input, shape index: {}]   ;;  %s4541_s1 = inlined_call_operand.vmem [shape: f32[8,8,128], index: 1, kind: input, shape index: {}]   ;;  %s4542_s4 = inlined_call_operand.vmem [shape: f32[136,128], index: 4, kind: input, shape index: {}]   ;;  %s4543_s5 = inlined_call_operand.vmem [shape: f32[8,8,128], index: 5, kind: output, shape index: {}]  }
   0x1   :  { %v35_v0 = vld [vmem:[%s4538_s2 + $0x78] sm:$0xff]  ;;  %v34_v1 = vld [vmem:[%s4538_s2 + $0x70] sm:$0xff]  ;;  %2612 = vmatprep.subr.mxu0 %v3326_v2  ;;  %2644 = vmatprep.mubr.msk.f32.mxu0 %vm3327_vm0, %v3326_v2  ;;  %v33_v3 = vld [vmem:[%s4538_s2 + $0x68] sm:$0xff] }
   0x2   :  { %2533 = vmatprep.subr.mxu1 %v35_v0  ;;  %v32_v4 = vld [vmem:[%s4538_s2 + $0x60] sm:$0xff]  ;;  %v31_v6 = vld [vmem:[%s4538_s2 + $0x58] sm:$0xff]  ;;  %v30_v8 = vld [vmem:[%s4538_s2 + $0x50] sm:$0xff] }
   0x3   :  { %2534 = vmatpush3.msra.mxu1 %v35_v0  ;;  %v54_v5 = vld [vmem:[%s4539_s0] sm:$0xff]  ;;  %v3385_v7 = vld [vmem:[%s4538_s2 + $0xf8] sm:$0xff]  ;;  %v3394_v9 = vld [vmem:[%s4538_s2 + $0xf0] sm:$0xff] }
   0x4   :  { %2535 = vmatprep.subr.mxu1 %v34_v1  ;;  %2565 = vmatprep.mubr.f32.mxu1 %v54_v5  ;;  %v29_v10 = vld [vmem:[%s4538_s2 + $0x48] sm:$0xff]  ;;  %v28_v12 = vld [vmem:[%s4538_s2 + $0x40] sm:$0xff]  ;;  %v27_v14 = vld [vmem:[%s4538_s2 + $0x38] sm:$0xff] }
   0x5   :  { %2536 = vmatpush3.msra.mxu1 %v34_v1  ;;  %2613 = vmatpush3.msra.mxu0 %v3385_v7  ;;  %v3404_v11 = vld [vmem:[%s4538_s2 + $0xe8] sm:$0xff]  ;;  %v3414_v13 = vld [vmem:[%s4538_s2 + $0xe0] sm:$0xff]  ;;  %v3424_v15 = vld [vmem:[%s4538_s2 + $0xd8] sm:$0xff] }
   0x6   :  { %2537 = vmatprep.subr.mxu1 %v33_v3  ;;  %2614 = vmatprep.subr.mxu0 %v3326_v2  ;;  %v26_v16 = vld [vmem:[%s4538_s2 + $0x30] sm:$0xff]  ;;  %v25_v18 = vld [vmem:[%s4538_s2 + $0x28] sm:$0xff]  ;;  %v24_v20 = vld [vmem:[%s4538_s2 + $0x20] sm:$0xff] }
   0x7   :  { %2538 = vmatpush3.msra.mxu1 %v33_v3  ;;  %2615 = vmatpush3.msra.mxu0 %v3394_v9  ;;  %v3434_v17 = vld [vmem:[%s4538_s2 + $0xd0] sm:$0xff]  ;;  %v3444_v19 = vld [vmem:[%s4538_s2 + $0xc8] sm:$0xff]  ;;  %v3454_v21 = vld [vmem:[%s4538_s2 + $0xc0] sm:$0xff] }
   0x8   :  { %2539 = vmatprep.subr.mxu1 %v32_v4  ;;  %2616 = vmatprep.subr.mxu0 %v3326_v2  ;;  %v23_v22 = vld [vmem:[%s4538_s2 + $0x18] sm:$0xff]  ;;  %v22_v24 = vld [vmem:[%s4538_s2 + $0x10] sm:$0xff]  ;;  %v21_v26 = vld [vmem:[%s4538_s2 + $0x8] sm:$0xff] }
   0x9   :  { %2540 = vmatpush3.msra.mxu1 %v32_v4  ;;  %2617 = vmatpush3.msra.mxu0 %v3404_v11  ;;  %v3464_v23 = vld [vmem:[%s4538_s2 + $0xb8] sm:$0xff]  ;;  %v3474_v25 = vld [vmem:[%s4538_s2 + $0xb0] sm:$0xff]  ;;  %v3484_v27 = vld [vmem:[%s4538_s2 + $0xa8] sm:$0xff] }
   0xa   :  { %2541 = vmatprep.subr.mxu1 %v31_v6  ;;  %2618 = vmatprep.subr.mxu0 %v3326_v2  ;;  %v20_v28 = vld [vmem:[%s4538_s2] sm:$0xff]  ;;  %v55_v30 = vld [vmem:[%s4539_s0 + $0x8] sm:$0xff]  ;;  %v3504_v31 = vld [vmem:[%s4538_s2 + $0x98] sm:$0xff] }
   0xb   :  { %2542 = vmatpush3.msra.mxu1 %v31_v6  ;;  %2619 = vmatpush3.msra.mxu0 %v3414_v13  ;;  %v3494_v29 = vld [vmem:[%s4538_s2 + $0xa0] sm:$0xff]  ;;  %v56_v32 = vld [vmem:[%s4539_s0 + $0x10] sm:$0xff]  ;;  %v57_v33 = vld [vmem:[%s4539_s0 + $0x18] sm:$0xff] }
   0xc   :  { %2543 = vmatprep.subr.mxu1 %v30_v8  ;;  %2620 = vmatprep.subr.mxu0 %v3326_v2  ;;  %v3520_v34 = vld [vmem:[%s4538_s2 + $0x90] sm:$0xff]  ;;  %v58_v35 = vld [vmem:[%s4539_s0 + $0x20] sm:$0xff]  ;;  %v59_v36 = vld [vmem:[%s4539_s0 + $0x28] sm:$0xff] }
   0xd   :  { %2544 = vmatpush3.msra.mxu1 %v30_v8  ;;  %2621 = vmatpush3.msra.mxu0 %v3424_v15  ;;  %v3537_v37 = vld [vmem:[%s4538_s2 + $0x88] sm:$0xff]  ;;  %v60_v38 = vld [vmem:[%s4539_s0 + $0x30] sm:$0xff]  ;;  %v61_v39 = vld [vmem:[%s4539_s0 + $0x38] sm:$0xff] }
   0xe   :  { %2545 = vmatprep.subr.mxu1 %v29_v10  ;;  %2622 = vmatprep.subr.mxu0 %v3326_v2  ;;  %v3554_v40 = vld [vmem:[%s4538_s2 + $0x80] sm:$0xff]  ;;  %v3638_v57 = vld [vmem:[%s4538_s2 + $0x108] ss:$0 sm:$0xff] }
   0xf   :  { %2546 = vmatpush3.msra.mxu1 %v29_v10  ;;  %2623 = vmatpush3.msra.mxu0 %v3434_v17  ;;  %v2145_v41 = vld [vmem:[%s4538_s2 + $0x100] ss:$0 sm:$0xff]  ;;  %s3329_s2 = smov 96  }
  0x10   :  { %2547 = vmatprep.subr.mxu1 %v28_v12  ;;  %2624 = vmatprep.subr.mxu0 %v3326_v2 }
  0x11   :  { %2548 = vmatpush3.msra.mxu1 %v28_v12  ;;  %2625 = vmatpush3.msra.mxu0 %v3444_v19 }
  0x12   :  { %2549 = vmatprep.subr.mxu1 %v27_v14  ;;  %2626 = vmatprep.subr.mxu0 %v3326_v2 }
  0x13   :  { %2550 = vmatpush3.msra.mxu1 %v27_v14  ;;  %2627 = vmatpush3.msra.mxu0 %v3454_v21 }
  0x14   :  { %2551 = vmatprep.subr.mxu1 %v26_v16  ;;  %2628 = vmatprep.subr.mxu0 %v3326_v2 }
  0x15   :  { %2552 = vmatpush3.msra.mxu1 %v26_v16  ;;  %2629 = vmatpush3.msra.mxu0 %v3464_v23 }
  0x16   :  { %2553 = vmatprep.subr.mxu1 %v25_v18  ;;  %2630 = vmatprep.subr.mxu0 %v3326_v2 }
  0x17   :  { %2554 = vmatpush3.msra.mxu1 %v25_v18  ;;  %2631 = vmatpush3.msra.mxu0 %v3474_v25 }
  0x18   :  { %2555 = vmatprep.subr.mxu1 %v24_v20  ;;  %2632 = vmatprep.subr.mxu0 %v3326_v2 }
  0x19   :  { %2556 = vmatpush3.msra.mxu1 %v24_v20  ;;  %2633 = vmatpush3.msra.mxu0 %v3484_v27 }
  0x1a   :  { %2557 = vmatprep.subr.mxu1 %v23_v22  ;;  %2634 = vmatprep.subr.mxu0 %v3326_v2 }
  0x1b   :  { %2558 = vmatpush3.msra.mxu1 %v23_v22  ;;  %2635 = vmatpush3.msra.mxu0 %v3494_v29 }
  0x1c   :  { %2559 = vmatprep.subr.mxu1 %v22_v24  ;;  %2636 = vmatprep.subr.mxu0 %v3326_v2 }
  0x1d   :  { %2560 = vmatpush3.msra.mxu1 %v22_v24  ;;  %2637 = vmatpush3.msra.mxu0 %v3504_v31 }
  0x1e   :  { %2561 = vmatprep.subr.mxu1 %v21_v26  ;;  %2638 = vmatprep.subr.mxu0 %v3326_v2 }
  0x1f   :  { %2562 = vmatpush3.msra.mxu1 %v21_v26  ;;  %2639 = vmatpush3.msra.mxu0 %v3520_v34 }
  0x20   :  { %2563 = vmatprep.subr.mxu1 %v20_v28  ;;  %2640 = vmatprep.subr.mxu0 %v3326_v2 }
  0x21   :  { %2564 = vmatpush3.msra.mxu1 %v20_v28  ;;  %2641 = vmatpush3.msra.mxu0 %v3537_v37 }
  0x22   :  { %2566 = vmatmul.mubr.f32.vlgmr.msra.gmra.mxu1 %v55_v30  ;;  %2577 = vmatprep.subr.mxu1 %v3326_v2 }
  0x23   :  { %2578 = vmatpush3.msra.mxu1 %v3385_v7  ;;  %2568 = vmatprep.mubr.f32.mxu1 %v56_v32 }
  0x24   :  { %2579 = vmatprep.subr.mxu1 %v3326_v2  ;;  %2642 = vmatprep.subr.mxu0 %v3326_v2 }
  0x25   :  { %2580 = vmatpush3.msra.mxu1 %v3394_v9  ;;  %2643 = vmatpush3.msra.mxu0 %v3554_v40 }
  0x26   :  { %2581 = vmatprep.subr.mxu1 %v3326_v2  ;;  %2569 = vmatmul.mubr.f32.gmra.mxu1 %v57_v33 }
  0x27   :  { %2582 = vmatpush3.msra.mxu1 %v3404_v11  ;;  %2571 = vmatprep.mubr.f32.mxu1 %v58_v35 }
  0x28   :  { %2583 = vmatprep.subr.mxu1 %v3326_v2  ;;  %2682 = vmatprep.subr.mxu0 %v3326_v2 }
  0x29   :  { %2584 = vmatpush3.msra.mxu1 %v3414_v13 }
  0x2a   :  { %2585 = vmatprep.subr.mxu1 %v3326_v2  ;;  %2572 = vmatmul.mubr.f32.gmra.mxu1 %v59_v36 }
  0x2b   :  { %2586 = vmatpush3.msra.mxu1 %v3424_v15  ;;  %2574 = vmatprep.mubr.f32.mxu1 %v60_v38 }
  0x2c   :  { %2587 = vmatprep.subr.mxu1 %v3326_v2 }
  0x2d   :  { %2588 = vmatpush3.msra.mxu1 %v3434_v17 }
  0x2e   :  { %2589 = vmatprep.subr.mxu1 %v3326_v2  ;;  %2575 = vmatmul.mubr.f32.gmra.mxu1 %v61_v39 }
  0x2f   :  { %2590 = vmatpush3.msra.mxu1 %v3444_v19  ;;  %2609 = vmatprep.mubr.msk.f32.mxu1 %vm3327_vm0, %v3326_v2 }
  0x30   :  { %2591 = vmatprep.subr.mxu1 %v3326_v2 }
  0x31   :  { %2592 = vmatpush3.msra.mxu1 %v3454_v21 }
  0x32   :  { %2593 = vmatprep.subr.mxu1 %v3326_v2 }
  0x33   :  { %2594 = vmatpush3.msra.mxu1 %v3464_v23 }
  0x34   :  { %2595 = vmatprep.subr.mxu1 %v3326_v2 }
  0x35   :  { %2596 = vmatpush3.msra.mxu1 %v3474_v25 }
  0x36   :  { %2597 = vmatprep.subr.mxu1 %v3326_v2 }
  0x37   :  { %2598 = vmatpush3.msra.mxu1 %v3484_v27 }
  0x38   :  { %2599 = vmatprep.subr.mxu1 %v3326_v2 }
  0x39   :  { %2600 = vmatpush3.msra.mxu1 %v3494_v29 }
  0x3a   :  { %2601 = vmatprep.subr.mxu1 %v3326_v2 }
  0x3b   :  { %2602 = vmatpush3.msra.mxu1 %v3504_v31 }
  0x3c   :  { %2603 = vmatprep.subr.mxu1 %v3326_v2 }
  0x3d   :  { %2604 = vmatpush3.msra.mxu1 %v3520_v34 }
  0x3e   :  { %2605 = vmatprep.subr.mxu1 %v3326_v2 }
  0x3f   :  { %2606 = vmatpush3.msra.mxu1 %v3537_v37 }
  0x40   :  { %2607 = vmatprep.subr.mxu1 %v3326_v2 }
  0x41   :  { %2608 = vmatpush3.msra.mxu1 %v3554_v40 }
  0x42   :  { %2610 = vmatmul.mubr.f32.vlgmr.msra.gmra.mxu1 %v3326_v2  ;;  %2647 = vmatprep.subr.mxu1 %v3326_v2 }
  0x43   :  { %2648 = vmatpush3.msra.mxu1 %v3385_v7  ;;  %2679 = vmatprep.mubr.msk.f32.mxu1 %vm3327_vm0, %v3326_v2 }
  0x44   :  { %2649 = vmatprep.subr.mxu1 %v3326_v2 }
  0x45   :  { %2650 = vmatpush3.msra.mxu1 %v3394_v9 }
  0x46   :  { %2651 = vmatprep.subr.mxu1 %v3326_v2 }
  0x47   :  { %2652 = vmatpush3.msra.mxu1 %v3404_v11 }
  0x48   :  { %2653 = vmatprep.subr.mxu1 %v3326_v2 }
  0x49   :  { %2654 = vmatpush3.msra.mxu1 %v3414_v13 }
  0x4a   :  { %2655 = vmatprep.subr.mxu1 %v3326_v2 }
  0x4b   :  { %2656 = vmatpush3.msra.mxu1 %v3424_v15 }
  0x4c   :  { %2657 = vmatprep.subr.mxu1 %v3326_v2 }
  0x4d   :  { %2658 = vmatpush3.msra.mxu1 %v3434_v17 }
  0x4e   :  { %2659 = vmatprep.subr.mxu1 %v3326_v2 }
  0x4f   :  { %2660 = vmatpush3.msra.mxu1 %v3444_v19 }
  0x50   :  { %2661 = vmatprep.subr.mxu1 %v3326_v2 }
  0x51   :  { %2662 = vmatpush3.msra.mxu1 %v3454_v21 }
  0x52   :  { %2663 = vmatprep.subr.mxu1 %v3326_v2 }
  0x53   :  { %2664 = vmatpush3.msra.mxu1 %v3464_v23 }
  0x54   :  { %2665 = vmatprep.subr.mxu1 %v3326_v2 }
  0x55   :  { %2666 = vmatpush3.msra.mxu1 %v3474_v25 }
  0x56   :  { %2667 = vmatprep.subr.mxu1 %v3326_v2 }
  0x57   :  { %2668 = vmatpush3.msra.mxu1 %v3484_v27 }
  0x58   :  { %2669 = vmatprep.subr.mxu1 %v3326_v2 }
  0x59   :  { %2670 = vmatpush3.msra.mxu1 %v3494_v29 }
  0x5a   :  { %2671 = vmatprep.subr.mxu1 %v3326_v2 }
  0x5b   :  { %2672 = vmatpush3.msra.mxu1 %v3504_v31 }
  0x5c   :  { %2673 = vmatprep.subr.mxu1 %v3326_v2 }
  0x5d   :  { %2674 = vmatpush3.msra.mxu1 %v3520_v34 }
  0x5e   :  { %2675 = vmatprep.subr.mxu1 %v3326_v2 }
  0x5f   :  { %2676 = vmatpush3.msra.mxu1 %v3537_v37 }
  0x60   :  { %2677 = vmatprep.subr.mxu1 %v3326_v2 }
  0x61   :  { %2678 = vmatpush3.msra.mxu1 %v3554_v40 }
  0x62   :  { %2717 = vmatprep.subr.mxu1 %v3326_v2 }
  0xe2   :  { %v2567_v42 = vpop.f32.mrf.mxu1 }
  0xe3   :  { %v3621_v43 = vadd.f32 %v2567_v42, %v2145_v41 }
  0xe4   :  { %v132_v44 = vpop.f32.mrf.mxu1 }
  0xe5   :  { %v133_v61 = vadd.f32 %v2145_v41, %v132_v44 }
  0xe6   :  { %v2570_v45 = vpop.f32.mrf.mxu1 }
  0xe7   :  { %v3623_v46 = vadd.f32 %v2570_v45, %v2145_v41 }
  0xe8   :  { %v142_v47 = vpop.f32.mrf.mxu1 }
  0xe9   :  { %v3625_v48 = vadd.f32 %v2145_v41, %v142_v47 }
  0xea   :  { %v2573_v49 = vpop.f32.mrf.mxu1 }
  0xeb   :  { %v3627_v50 = vadd.f32 %v2573_v49, %v2145_v41 }
  0xec   :  { %v152_v51 = vpop.f32.mrf.mxu1 }
  0xed   :  { %v3629_v52 = vadd.f32 %v2145_v41, %v152_v51 }
  0xee   :  { %v2576_v53 = vpop.f32.mrf.mxu1 }
  0xef   :  { %v3631_v54 = vadd.f32 %v2576_v53, %v2145_v41 }
  0xf0   :  { %v162_v55 = vpop.f32.mrf.mxu1 }
  0xf1   :  { %v3633_v56 = vadd.f32 %v2145_v41, %v162_v55 }
 0x102   :  { %v241_v58 = vpop.f32.mrf.mxu1 }
 0x103   :  { %v242_v59 = vadd.f32 %v3638_v57, %v241_v58 }
 0x104   :  { %v2611_v60 = vpop.f32.mrf.mxu1 }
 0x105   :  { %253 = vrot.lane.b32.xlu0 %v242_v59, %s3328_s26  ;;  %v245_v62 = vadd.f32 %v242_v59, %v133_v61 }
 0x107   :  { %v2147_v63 = vmul.f32 -1.442695, %v245_v62 }
 0x109   :  { %3230 = vpow2.f32 %v2147_v63 }
 0x116   :  { %v3231_v0 = vpop.eup %3230 }
 0x117   :  { %v249_v1 = vadd.f32 1.0, %v3231_v0 }
 0x119   :  { %3232 = vrcp.f32 %v249_v1 }
 0x126   :  { %v3233_v3 = vpop.eup %3232 }
 0x127   :  { %v263_v12 = vsub.f32 1.0, %v3233_v3  ;;  %v269_v16 = vmul.f32 0.0, %v3233_v3 }
 0x177   :  { %v254_v4 = vpop.permute.xlu0 %253 }
 0x178   :  { %v256_v5 = vmul.f32 %v3233_v3, %v254_v4 }
 0x17a   :  { %258 = vrot.lane.b32.xlu0 %v256_v5, %s3328_s26 }
 0x1ec   :  { %v259_v6 = vpop.permute.xlu0 %258 }
 0x1ed   :  { %v261_v8 = vadd.f32 %v259_v6, %v133_v61 }
 0x1ef   :  { %3234 = vtanh.f32 %v261_v8 }
 0x1fc   :  { %v3235_v10 = vpop.eup %3234 }
 0x1fd   :  { %265 = vrot.lane.b32.xlu1 %v3235_v10, %s3329_s2 }
 0x26f   :  { %v266_v14 = vpop.permute.xlu1 %265 }
 0x270   :  { %v268_v18 = vmul.f32 %v266_v14, %v263_v12 }
 0x272   :  { %v270_v20 = vadd.f32 %v269_v16, %v268_v18 }
 0x274   :  { %272 = vrot.lane.b32.xlu1 %v270_v20, %s3329_s2 }
 0x2e6   :  { %v273_v22 = vpop.permute.xlu1 %272 }
 0x2e7   :  { %2645 = vmatmul.mubr.msk.f32.vlgmr.msra.gmra.mxu0 %vm275_vm1, %v273_v22  ;;  %v276_v41 = vsel %vm275_vm1, %v273_v22, 0.0 }
 0x2e8   :  { %2683 = vmatpush3.msra.mxu0 %v3385_v7  ;;  %2714 = vmatprep.mubr.msk.f32.mxu0 %vm3327_vm0, %v3326_v2 }
 0x2e9   :  { %2684 = vmatprep.subr.mxu0 %v3326_v2 }
 0x2ea   :  { %2685 = vmatpush3.msra.mxu0 %v3394_v9 }
 0x2eb   :  { %2686 = vmatprep.subr.mxu0 %v3326_v2 }
 0x2ec   :  { %2687 = vmatpush3.msra.mxu0 %v3404_v11 }
 0x2ed   :  { %2688 = vmatprep.subr.mxu0 %v3326_v2 }
 0x2ee   :  { %2689 = vmatpush3.msra.mxu0 %v3414_v13 }
 0x2ef   :  { %2690 = vmatprep.subr.mxu0 %v3326_v2 }
 0x2f0   :  { %2691 = vmatpush3.msra.mxu0 %v3424_v15 }
 0x2f1   :  { %2692 = vmatprep.subr.mxu0 %v3326_v2 }
 0x2f2   :  { %2693 = vmatpush3.msra.mxu0 %v3434_v17 }
 0x2f3   :  { %2694 = vmatprep.subr.mxu0 %v3326_v2 }
 0x2f4   :  { %2695 = vmatpush3.msra.mxu0 %v3444_v19 }
 0x2f5   :  { %2696 = vmatprep.subr.mxu0 %v3326_v2 }
 0x2f6   :  { %2697 = vmatpush3.msra.mxu0 %v3454_v21 }
 0x2f7   :  { %2698 = vmatprep.subr.mxu0 %v3326_v2 }
 0x2f8   :  { %2699 = vmatpush3.msra.mxu0 %v3464_v23 }
 0x2f9   :  { %2700 = vmatprep.subr.mxu0 %v3326_v2 }
 0x2fa   :  { %2701 = vmatpush3.msra.mxu0 %v3474_v25 }
 0x2fb   :  { %2702 = vmatprep.subr.mxu0 %v3326_v2 }
 0x2fc   :  { %2703 = vmatpush3.msra.mxu0 %v3484_v27 }
 0x2fd   :  { %2704 = vmatprep.subr.mxu0 %v3326_v2 }
 0x2fe   :  { %2705 = vmatpush3.msra.mxu0 %v3494_v29 }
 0x2ff   :  { %2706 = vmatprep.subr.mxu0 %v3326_v2 }
 0x300   :  { %2707 = vmatpush3.msra.mxu0 %v3504_v31 }
 0x301   :  { %2708 = vmatprep.subr.mxu0 %v3326_v2 }
 0x302   :  { %2709 = vmatpush3.msra.mxu0 %v3520_v34 }
 0x303   :  { %2710 = vmatprep.subr.mxu0 %v3326_v2 }
 0x304   :  { %2711 = vmatpush3.msra.mxu0 %v3537_v37 }
 0x305   :  { %2712 = vmatprep.subr.mxu0 %v3326_v2 }
 0x306   :  { %2713 = vmatpush3.msra.mxu0 %v3554_v40 }
 0x307   :  { %2752 = vmatprep.subr.mxu0 %v3326_v2 }
 0x3a7   :  { %v343_v24 = vpop.f32.mrf.mxu0 }
 0x3a8   :  { %v344_v26 = vadd.f32 %v3638_v57, %v343_v24 }
 0x3a9   :  { %v2646_v28 = vpop.f32.mrf.mxu0 }
 0x3aa   :  { %355 = vrot.lane.b32.xlu0 %v344_v26, %s3328_s26  ;;  %v347_v30 = vadd.f32 %v344_v26, %v3621_v43 }
 0x3ac   :  { %v2149_v32 = vmul.f32 -1.442695, %v347_v30 }
 0x3ae   :  { %3236 = vpow2.f32 %v2149_v32 }
 0x3bb   :  { %v3237_v33 = vpop.eup %3236 }
 0x3bc   :  { %v351_v35 = vadd.f32 1.0, %v3237_v33 }
 0x3be   :  { %3238 = vrcp.f32 %v351_v35 }
 0x3cb   :  { %v3239_v36 = vpop.eup %3238 }
 0x3cc   :  { %v365_v49 = vsub.f32 1.0, %v3239_v36 }
 0x41c   :  { %v356_v38 = vpop.permute.xlu0 %355 }
 0x41d   :  { %v358_v39 = vmul.f32 %v3239_v36, %v356_v38 }
 0x41f   :  { %360 = vrot.lane.b32.xlu1 %v358_v39, %s3328_s26 }
 0x423   :  { %372 = vrot.lane.b32.xlu1 %v276_v41, %s3330_s27 }
 0x491   :  { %v361_v42 = vpop.permute.xlu1 %360 }
 0x492   :  { %v363_v44 = vadd.f32 %v361_v42, %v3621_v43 }
 0x494   :  { %3240 = vtanh.f32 %v363_v44 }
 0x495   :  { %v373_v47 = vpop.permute.xlu1 %372 }
 0x496   :  { %v375_v53 = vmul.f32 %v3239_v36, %v373_v47 }
 0x4a1   :  { %v3241_v45 = vpop.eup %3240 }
 0x4a2   :  { %367 = vrot.lane.b32.xlu0 %v3241_v45, %s3329_s2 }
 0x514   :  { %v368_v51 = vpop.permute.xlu0 %367 }
 0x515   :  { %v370_v55 = vmul.f32 %v368_v51, %v365_v49 }
 0x517   :  { %v376_v58 = vadd.f32 %v375_v53, %v370_v55 }
 0x519   :  { %378 = vrot.lane.b32.xlu0 %v376_v58, %s3329_s2 }
 0x58b   :  { %v379_v59 = vpop.permute.xlu0 %378 }
 0x58c   :  { %2680 = vmatmul.mubr.msk.f32.vlgmr.msra.gmra.mxu1 %vm275_vm1, %v379_v59  ;;  %v381_v6 = vsel %vm275_vm1, %v379_v59, 0.0 }
 0x58d   :  { %2718 = vmatpush3.msra.mxu1 %v3385_v7  ;;  %2749 = vmatprep.mubr.msk.f32.mxu1 %vm3327_vm0, %v3326_v2 }
 0x58e   :  { %2719 = vmatprep.subr.mxu1 %v3326_v2 }
 0x58f   :  { %2720 = vmatpush3.msra.mxu1 %v3394_v9 }
 0x590   :  { %2721 = vmatprep.subr.mxu1 %v3326_v2 }
 0x591   :  { %2722 = vmatpush3.msra.mxu1 %v3404_v11 }
 0x592   :  { %2723 = vmatprep.subr.mxu1 %v3326_v2 }
 0x593   :  { %2724 = vmatpush3.msra.mxu1 %v3414_v13 }
 0x594   :  { %2725 = vmatprep.subr.mxu1 %v3326_v2 }
 0x595   :  { %2726 = vmatpush3.msra.mxu1 %v3424_v15 }
 0x596   :  { %2727 = vmatprep.subr.mxu1 %v3326_v2 }
 0x597   :  { %2728 = vmatpush3.msra.mxu1 %v3434_v17 }
 0x598   :  { %2729 = vmatprep.subr.mxu1 %v3326_v2 }
 0x599   :  { %2730 = vmatpush3.msra.mxu1 %v3444_v19 }
 0x59a   :  { %2731 = vmatprep.subr.mxu1 %v3326_v2 }
 0x59b   :  { %2732 = vmatpush3.msra.mxu1 %v3454_v21 }
 0x59c   :  { %2733 = vmatprep.subr.mxu1 %v3326_v2 }
 0x59d   :  { %2734 = vmatpush3.msra.mxu1 %v3464_v23 }
 0x59e   :  { %2735 = vmatprep.subr.mxu1 %v3326_v2 }
 0x59f   :  { %2736 = vmatpush3.msra.mxu1 %v3474_v25 }
 0x5a0   :  { %2737 = vmatprep.subr.mxu1 %v3326_v2 }
 0x5a1   :  { %2738 = vmatpush3.msra.mxu1 %v3484_v27 }
 0x5a2   :  { %2739 = vmatprep.subr.mxu1 %v3326_v2 }
 0x5a3   :  { %2740 = vmatpush3.msra.mxu1 %v3494_v29 }
 0x5a4   :  { %2741 = vmatprep.subr.mxu1 %v3326_v2 }
 0x5a5   :  { %2742 = vmatpush3.msra.mxu1 %v3504_v31 }
 0x5a6   :  { %2743 = vmatprep.subr.mxu1 %v3326_v2 }
 0x5a7   :  { %2744 = vmatpush3.msra.mxu1 %v3520_v34 }
 0x5a8   :  { %2745 = vmatprep.subr.mxu1 %v3326_v2 }
 0x5a9   :  { %2746 = vmatpush3.msra.mxu1 %v3537_v37 }
 0x5aa   :  { %2747 = vmatprep.subr.mxu1 %v3326_v2 }
 0x5ab   :  { %2748 = vmatpush3.msra.mxu1 %v3554_v40 }
 0x5ac   :  { %2787 = vmatprep.subr.mxu1 %v3326_v2 }
 0x64c   :  { %v448_v43 = vpop.f32.mrf.mxu1 }
 0x64d   :  { %v449_v60 = vadd.f32 %v3638_v57, %v448_v43 }
 0x64e   :  { %v2681_v61 = vpop.f32.mrf.mxu1 }
 0x64f   :  { %460 = vrot.lane.b32.xlu1 %v449_v60, %s3328_s26  ;;  %v452_v62 = vadd.f32 %v449_v60, %v3625_v48 }
 0x651   :  { %v2151_v63 = vmul.f32 -1.442695, %v452_v62 }
 0x653   :  { %3242 = vpow2.f32 %v2151_v63 }
 0x660   :  { %v3243_v0 = vpop.eup %3242 }
 0x661   :  { %v456_v1 = vadd.f32 1.0, %v3243_v0 }
 0x663   :  { %3244 = vrcp.f32 %v456_v1 }
 0x670   :  { %v3245_v3 = vpop.eup %3244 }
 0x671   :  { %v470_v16 = vsub.f32 1.0, %v3245_v3 }
 0x6c1   :  { %v461_v4 = vpop.permute.xlu1 %460 }
 0x6c2   :  { %v463_v5 = vmul.f32 %v3245_v3, %v461_v4 }
 0x6c4   :  { %465 = vrot.lane.b32.xlu0 %v463_v5, %s3328_s26 }
 0x6c8   :  { %477 = vrot.lane.b32.xlu0 %v381_v6, %s3330_s27 }
 0x736   :  { %v466_v8 = vpop.permute.xlu0 %465 }
 0x737   :  { %v468_v10 = vadd.f32 %v466_v8, %v3625_v48 }
 0x739   :  { %3246 = vtanh.f32 %v468_v10 }
 0x73a   :  { %v478_v14 = vpop.permute.xlu0 %477 }
 0x73b   :  { %v480_v20 = vmul.f32 %v3245_v3, %v478_v14 }
 0x746   :  { %v3247_v12 = vpop.eup %3246 }
 0x747   :  { %472 = vrot.lane.b32.xlu1 %v3247_v12, %s3329_s2 }
 0x7b9   :  { %v473_v18 = vpop.permute.xlu1 %472 }
 0x7ba   :  { %v475_v22 = vmul.f32 %v473_v18, %v470_v16 }
 0x7bc   :  { %v481_v24 = vadd.f32 %v480_v20, %v475_v22 }
 0x7be   :  { %483 = vrot.lane.b32.xlu1 %v481_v24, %s3329_s2 }
 0x830   :  { %v484_v26 = vpop.permute.xlu1 %483 }
 0x831   :  { %2715 = vmatmul.mubr.msk.f32.vlgmr.msra.gmra.mxu0 %vm275_vm1, %v484_v26  ;;  %v486_v42 = vsel %vm275_vm1, %v484_v26, 0.0 }
 0x832   :  { %2753 = vmatpush3.msra.mxu0 %v3385_v7  ;;  %2784 = vmatprep.mubr.msk.f32.mxu0 %vm3327_vm0, %v3326_v2 }
 0x833   :  { %2754 = vmatprep.subr.mxu0 %v3326_v2 }
 0x834   :  { %2755 = vmatpush3.msra.mxu0 %v3394_v9 }
 0x835   :  { %2756 = vmatprep.subr.mxu0 %v3326_v2 }
 0x836   :  { %2757 = vmatpush3.msra.mxu0 %v3404_v11 }
 0x837   :  { %2758 = vmatprep.subr.mxu0 %v3326_v2 }
 0x838   :  { %2759 = vmatpush3.msra.mxu0 %v3414_v13 }
 0x839   :  { %2760 = vmatprep.subr.mxu0 %v3326_v2 }
 0x83a   :  { %2761 = vmatpush3.msra.mxu0 %v3424_v15 }
 0x83b   :  { %2762 = vmatprep.subr.mxu0 %v3326_v2 }
 0x83c   :  { %2763 = vmatpush3.msra.mxu0 %v3434_v17 }
 0x83d   :  { %2764 = vmatprep.subr.mxu0 %v3326_v2 }
 0x83e   :  { %2765 = vmatpush3.msra.mxu0 %v3444_v19 }
 0x83f   :  { %2766 = vmatprep.subr.mxu0 %v3326_v2 }
 0x840   :  { %2767 = vmatpush3.msra.mxu0 %v3454_v21 }
 0x841   :  { %2768 = vmatprep.subr.mxu0 %v3326_v2 }
 0x842   :  { %2769 = vmatpush3.msra.mxu0 %v3464_v23 }
 0x843   :  { %2770 = vmatprep.subr.mxu0 %v3326_v2 }
 0x844   :  { %2771 = vmatpush3.msra.mxu0 %v3474_v25 }
 0x845   :  { %2772 = vmatprep.subr.mxu0 %v3326_v2 }
 0x846   :  { %2773 = vmatpush3.msra.mxu0 %v3484_v27 }
 0x847   :  { %2774 = vmatprep.subr.mxu0 %v3326_v2 }
 0x848   :  { %2775 = vmatpush3.msra.mxu0 %v3494_v29 }
 0x849   :  { %2776 = vmatprep.subr.mxu0 %v3326_v2 }
 0x84a   :  { %2777 = vmatpush3.msra.mxu0 %v3504_v31 }
 0x84b   :  { %2778 = vmatprep.subr.mxu0 %v3326_v2 }
 0x84c   :  { %2779 = vmatpush3.msra.mxu0 %v3520_v34 }
 0x84d   :  { %2780 = vmatprep.subr.mxu0 %v3326_v2 }
 0x84e   :  { %2781 = vmatpush3.msra.mxu0 %v3537_v37 }
 0x84f   :  { %2782 = vmatprep.subr.mxu0 %v3326_v2 }
 0x850   :  { %2783 = vmatpush3.msra.mxu0 %v3554_v40 }
 0x851   :  { %2822 = vmatprep.subr.mxu0 %v3326_v2 }
 0x8f1   :  { %v553_v48 = vpop.f32.mrf.mxu0 }
 0x8f2   :  { %v554_v28 = vadd.f32 %v3638_v57, %v553_v48 }
 0x8f3   :  { %v2716_v30 = vpop.f32.mrf.mxu0 }
 0x8f4   :  { %565 = vrot.lane.b32.xlu0 %v554_v28, %s3328_s26  ;;  %v557_v32 = vadd.f32 %v554_v28, %v3623_v46 }
 0x8f6   :  { %v2153_v33 = vmul.f32 -1.442695, %v557_v32 }
 0x8f8   :  { %3248 = vpow2.f32 %v2153_v33 }
 0x905   :  { %v3249_v35 = vpop.eup %3248 }
 0x906   :  { %v561_v36 = vadd.f32 1.0, %v3249_v35 }
 0x908   :  { %3250 = vrcp.f32 %v561_v36 }
 0x915   :  { %v3251_v38 = vpop.eup %3250 }
 0x916   :  { %v575_v51 = vsub.f32 1.0, %v3251_v38 }
 0x966   :  { %v566_v39 = vpop.permute.xlu0 %565 }
 0x967   :  { %v568_v41 = vmul.f32 %v3251_v38, %v566_v39 }
 0x969   :  { %570 = vrot.lane.b32.xlu1 %v568_v41, %s3328_s26 }
 0x96d   :  { %582 = vrot.lane.b32.xlu1 %v486_v42, %s3330_s27 }
 0x9db   :  { %v571_v44 = vpop.permute.xlu1 %570 }
 0x9dc   :  { %v573_v45 = vadd.f32 %v571_v44, %v3623_v46 }
 0x9de   :  { %3252 = vtanh.f32 %v573_v45 }
 0x9df   :  { %v583_v49 = vpop.permute.xlu1 %582 }
 0x9e0   :  { %v585_v55 = vmul.f32 %v3251_v38, %v583_v49 }
 0x9eb   :  { %v3253_v47 = vpop.eup %3252 }
 0x9ec   :  { %577 = vrot.lane.b32.xlu0 %v3253_v47, %s3329_s2 }
 0xa5e   :  { %v578_v53 = vpop.permute.xlu0 %577 }
 0xa5f   :  { %v580_v58 = vmul.f32 %v578_v53, %v575_v51 }
 0xa61   :  { %v586_v59 = vadd.f32 %v585_v55, %v580_v58 }
 0xa63   :  { %588 = vrot.lane.b32.xlu0 %v586_v59, %s3329_s2 }
 0xad5   :  { %v589_v43 = vpop.permute.xlu0 %588 }
 0xad6   :  { %2750 = vmatmul.mubr.msk.f32.vlgmr.msra.gmra.mxu1 %vm275_vm1, %v589_v43  ;;  %v591_v6 = vsel %vm275_vm1, %v589_v43, 0.0 }
 0xad7   :  { %2788 = vmatpush3.msra.mxu1 %v3385_v7  ;;  %2819 = vmatprep.mubr.msk.f32.mxu1 %vm3327_vm0, %v3326_v2 }
 0xad8   :  { %2789 = vmatprep.subr.mxu1 %v3326_v2 }
 0xad9   :  { %2790 = vmatpush3.msra.mxu1 %v3394_v9 }
 0xada   :  { %2791 = vmatprep.subr.mxu1 %v3326_v2 }
 0xadb   :  { %2792 = vmatpush3.msra.mxu1 %v3404_v11 }
 0xadc   :  { %2793 = vmatprep.subr.mxu1 %v3326_v2 }
 0xadd   :  { %2794 = vmatpush3.msra.mxu1 %v3414_v13 }
 0xade   :  { %2795 = vmatprep.subr.mxu1 %v3326_v2 }
 0xadf   :  { %2796 = vmatpush3.msra.mxu1 %v3424_v15 }
 0xae0   :  { %2797 = vmatprep.subr.mxu1 %v3326_v2 }
 0xae1   :  { %2798 = vmatpush3.msra.mxu1 %v3434_v17 }
 0xae2   :  { %2799 = vmatprep.subr.mxu1 %v3326_v2 }
 0xae3   :  { %2800 = vmatpush3.msra.mxu1 %v3444_v19 }
 0xae4   :  { %2801 = vmatprep.subr.mxu1 %v3326_v2 }
 0xae5   :  { %2802 = vmatpush3.msra.mxu1 %v3454_v21 }
 0xae6   :  { %2803 = vmatprep.subr.mxu1 %v3326_v2 }
 0xae7   :  { %2804 = vmatpush3.msra.mxu1 %v3464_v23 }
 0xae8   :  { %2805 = vmatprep.subr.mxu1 %v3326_v2 }
 0xae9   :  { %2806 = vmatpush3.msra.mxu1 %v3474_v25 }
 0xaea   :  { %2807 = vmatprep.subr.mxu1 %v3326_v2 }
 0xaeb   :  { %2808 = vmatpush3.msra.mxu1 %v3484_v27 }
 0xaec   :  { %2809 = vmatprep.subr.mxu1 %v3326_v2 }
 0xaed   :  { %2810 = vmatpush3.msra.mxu1 %v3494_v29 }
 0xaee   :  { %2811 = vmatprep.subr.mxu1 %v3326_v2 }
 0xaef   :  { %2812 = vmatpush3.msra.mxu1 %v3504_v31 }
 0xaf0   :  { %2813 = vmatprep.subr.mxu1 %v3326_v2 }
 0xaf1   :  { %2814 = vmatpush3.msra.mxu1 %v3520_v34 }
 0xaf2   :  { %2815 = vmatprep.subr.mxu1 %v3326_v2 }
 0xaf3   :  { %2816 = vmatpush3.msra.mxu1 %v3537_v37 }
 0xaf4   :  { %2817 = vmatprep.subr.mxu1 %v3326_v2 }
 0xaf5   :  { %2818 = vmatpush3.msra.mxu1 %v3554_v40 }
 0xb96   :  { %v658_v46 = vpop.f32.mrf.mxu1 }
 0xb97   :  { %v659_v60 = vadd.f32 %v3638_v57, %v658_v46 }
 0xb98   :  { %v2751_v61 = vpop.f32.mrf.mxu1 }
 0xb99   :  { %670 = vrot.lane.b32.xlu1 %v659_v60, %s3328_s26  ;;  %v662_v62 = vadd.f32 %v659_v60, %v3629_v52 }
 0xb9b   :  { %v2155_v63 = vmul.f32 -1.442695, %v662_v62 }
 0xb9d   :  { %3254 = vpow2.f32 %v2155_v63 }
 0xbaa   :  { %v3255_v0 = vpop.eup %3254 }
 0xbab   :  { %v666_v1 = vadd.f32 1.0, %v3255_v0 }
 0xbad   :  { %3256 = vrcp.f32 %v666_v1 }
 0xbba   :  { %v3257_v3 = vpop.eup %3256 }
 0xbbb   :  { %v680_v16 = vsub.f32 1.0, %v3257_v3 }
 0xc0b   :  { %v671_v4 = vpop.permute.xlu1 %670 }
 0xc0c   :  { %v673_v5 = vmul.f32 %v3257_v3, %v671_v4 }
 0xc0e   :  { %675 = vrot.lane.b32.xlu0 %v673_v5, %s3328_s26 }
 0xc12   :  { %687 = vrot.lane.b32.xlu0 %v591_v6, %s3330_s27 }
 0xc80   :  { %v676_v8 = vpop.permute.xlu0 %675 }
 0xc81   :  { %v678_v10 = vadd.f32 %v676_v8, %v3629_v52 }
 0xc83   :  { %3258 = vtanh.f32 %v678_v10 }
 0xc84   :  { %v688_v14 = vpop.permute.xlu0 %687 }
 0xc85   :  { %v690_v20 = vmul.f32 %v3257_v3, %v688_v14  ;;  %v1027_v14 = vld [vmem:[%s4540_s3 + $0x78] sm:$0xff] }
 0xc86   :  { %2857 = vmatprep.subr.mxu1 %v1027_v14 }
 0xc90   :  { %v3259_v12 = vpop.eup %3258 }
 0xc91   :  { %682 = vrot.lane.b32.xlu1 %v3259_v12, %s3329_s2 }
 0xd03   :  { %v683_v18 = vpop.permute.xlu1 %682 }
 0xd04   :  { %v685_v22 = vmul.f32 %v683_v18, %v680_v16  ;;  %v1026_v16 = vld [vmem:[%s4540_s3 + $0x70] sm:$0xff]  ;;  %v3896_v18 = vld [vmem:[%s4540_s3 + $0xf8] sm:$0xff] }
 0xd06   :  { %v691_v24 = vadd.f32 %v690_v20, %v685_v22  ;;  %v1025_v20 = vld [vmem:[%s4540_s3 + $0x68] sm:$0xff] }
 0xd07   :  { %v3911_v22 = vld [vmem:[%s4540_s3 + $0xe8] sm:$0xff] }
 0xd08   :  { %693 = vrot.lane.b32.xlu1 %v691_v24, %s3329_s2  ;;  %v1024_v24 = vld [vmem:[%s4540_s3 + $0x60] sm:$0xff] }
 0xd7a   :  { %v694_v26 = vpop.permute.xlu1 %693 }
 0xd7b   :  { %2785 = vmatmul.mubr.msk.f32.vlgmr.msra.gmra.mxu0 %vm275_vm1, %v694_v26 }
 0xd7c   :  { %2823 = vmatpush3.msra.mxu0 %v3385_v7  ;;  %2854 = vmatprep.mubr.msk.f32.mxu0 %vm3327_vm0, %v3326_v2 }
 0xd7d   :  { %2824 = vmatprep.subr.mxu0 %v3326_v2 }
 0xd7e   :  { %2825 = vmatpush3.msra.mxu0 %v3394_v9 }
 0xd7f   :  { %2826 = vmatprep.subr.mxu0 %v3326_v2 }
 0xd80   :  { %2827 = vmatpush3.msra.mxu0 %v3404_v11 }
 0xd81   :  { %2828 = vmatprep.subr.mxu0 %v3326_v2 }
 0xd82   :  { %2829 = vmatpush3.msra.mxu0 %v3414_v13 }
 0xd83   :  { %2830 = vmatprep.subr.mxu0 %v3326_v2 }
 0xd84   :  { %2831 = vmatpush3.msra.mxu0 %v3424_v15 }
 0xd85   :  { %2832 = vmatprep.subr.mxu0 %v3326_v2 }
 0xd86   :  { %2833 = vmatpush3.msra.mxu0 %v3434_v17 }
 0xd87   :  { %2834 = vmatprep.subr.mxu0 %v3326_v2 }
 0xd88   :  { %2835 = vmatpush3.msra.mxu0 %v3444_v19 }
 0xd89   :  { %2836 = vmatprep.subr.mxu0 %v3326_v2 }
 0xd8a   :  { %2837 = vmatpush3.msra.mxu0 %v3454_v21 }
 0xd8b   :  { %2838 = vmatprep.subr.mxu0 %v3326_v2 }
 0xd8c   :  { %2839 = vmatpush3.msra.mxu0 %v3464_v23 }
 0xd8d   :  { %2840 = vmatprep.subr.mxu0 %v3326_v2 }
 0xd8e   :  { %2841 = vmatpush3.msra.mxu0 %v3474_v25 }
 0xd8f   :  { %2842 = vmatprep.subr.mxu0 %v3326_v2 }
 0xd90   :  { %2843 = vmatpush3.msra.mxu0 %v3484_v27  ;;  %v696_v27 = vsel %vm275_vm1, %v694_v26, 0.0  ;;  %v3921_v26 = vld [vmem:[%s4540_s3 + $0xe0] sm:$0xff] }
 0xd91   :  { %2844 = vmatprep.subr.mxu0 %v3326_v2 }
 0xd92   :  { %2845 = vmatpush3.msra.mxu0 %v3494_v29 }
 0xd93   :  { %2846 = vmatprep.subr.mxu0 %v3326_v2 }
 0xd94   :  { %2847 = vmatpush3.msra.mxu0 %v3504_v31 }
 0xd95   :  { %2848 = vmatprep.subr.mxu0 %v3326_v2 }
 0xd96   :  { %2849 = vmatpush3.msra.mxu0 %v3520_v34 }
 0xd97   :  { %2850 = vmatprep.subr.mxu0 %v3326_v2 }
 0xd98   :  { %2851 = vmatpush3.msra.mxu0 %v3537_v37 }
 0xd99   :  { %2852 = vmatprep.subr.mxu0 %v3326_v2 }
 0xd9a   :  { %2853 = vmatpush3.msra.mxu0 %v3554_v40 }
 0xd9b   :  { %2901 = vmatprep.subr.mxu0 %v3326_v2 }
 0xe3b   :  { %v763_v7 = vpop.f32.mrf.mxu0 }
 0xe3c   :  { %v764_v9 = vadd.f32 %v3638_v57, %v763_v7  ;;  %v1023_v7 = vld [vmem:[%s4540_s3 + $0x58] sm:$0xff] }
 0xe3d   :  { %v2786_v11 = vpop.f32.mrf.mxu0 }
 0xe3e   :  { %775 = vrot.lane.b32.xlu0 %v764_v9, %s3328_s26  ;;  %v767_v13 = vadd.f32 %v764_v9, %v3627_v50  ;;  %v3932_v11 = vld [vmem:[%s4540_s3 + $0xd8] sm:$0xff] }
 0xe40   :  { %v2157_v15 = vmul.f32 -1.442695, %v767_v13  ;;  %v1022_v13 = vld [vmem:[%s4540_s3 + $0x50] sm:$0xff] }
 0xe42   :  { %3260 = vpow2.f32 %v2157_v15  ;;  %v3942_v15 = vld [vmem:[%s4540_s3 + $0xd0] sm:$0xff] }
 0xe4f   :  { %v3261_v17 = vpop.eup %3260 }
 0xe50   :  { %v771_v19 = vadd.f32 1.0, %v3261_v17  ;;  %v1021_v17 = vld [vmem:[%s4540_s3 + $0x48] sm:$0xff] }
 0xe52   :  { %3262 = vrcp.f32 %v771_v19  ;;  %v3952_v19 = vld [vmem:[%s4540_s3 + $0xc8] sm:$0xff] }
 0xe5f   :  { %v3263_v21 = vpop.eup %3262 }
 0xe60   :  { %v785_v40 = vsub.f32 1.0, %v3263_v21 }
 0xeb0   :  { %v776_v23 = vpop.permute.xlu0 %775 }
 0xeb1   :  { %v778_v25 = vmul.f32 %v3263_v21, %v776_v23  ;;  %v3962_v23 = vld [vmem:[%s4540_s3 + $0xc0] sm:$0xff] }
 0xeb3   :  { %780 = vrot.lane.b32.xlu1 %v778_v25, %s3328_s26  ;;  %v1019_v25 = vld [vmem:[%s4540_s3 + $0x38] sm:$0xff] }
 0xeb7   :  { %792 = vrot.lane.b32.xlu1 %v696_v27, %s3330_s27  ;;  %v3972_v27 = vld [vmem:[%s4540_s3 + $0xb8] sm:$0xff] }
 0xf25   :  { %v781_v29 = vpop.permute.xlu1 %780 }
 0xf26   :  { %v783_v31 = vadd.f32 %v781_v29, %v3627_v50  ;;  %v1018_v29 = vld [vmem:[%s4540_s3 + $0x30] sm:$0xff] }
 0xf28   :  { %3264 = vtanh.f32 %v783_v31  ;;  %v3982_v31 = vld [vmem:[%s4540_s3 + $0xb0] sm:$0xff] }
 0xf29   :  { %v793_v37 = vpop.permute.xlu1 %792 }
 0xf2a   :  { %v795_v48 = vmul.f32 %v3263_v21, %v793_v37  ;;  %v1020_v21 = vld [vmem:[%s4540_s3 + $0x40] sm:$0xff]  ;;  %v3992_v37 = vld [vmem:[%s4540_s3 + $0xa8] sm:$0xff] }
 0xf35   :  { %v3265_v34 = vpop.eup %3264 }
 0xf36   :  { %787 = vrot.lane.b32.xlu0 %v3265_v34, %s3329_s2  ;;  %v1017_v34 = vld [vmem:[%s4540_s3 + $0x28] sm:$0xff] }
 0xfa8   :  { %v788_v52 = vpop.permute.xlu0 %787 }
 0xfa9   :  { %v790_v28 = vmul.f32 %v788_v52, %v785_v40  ;;  %v1016_v40 = vld [vmem:[%s4540_s3 + $0x20] sm:$0xff] }
 0xfaa   :  { %v4002_v52 = vld [vmem:[%s4540_s3 + $0xa0] sm:$0xff] }
 0xfab   :  { %v796_v30 = vadd.f32 %v795_v48, %v790_v28  ;;  %v1015_v48 = vld [vmem:[%s4540_s3 + $0x18] sm:$0xff] }
 0xfac   :  { %v4012_v28 = vld [vmem:[%s4540_s3 + $0x98] sm:$0xff] }
 0xfad   :  { %798 = vrot.lane.b32.xlu0 %v796_v30, %s3329_s2  ;;  %v1014_v30 = vld [vmem:[%s4540_s3 + $0x10] sm:$0xff] }
0x101f   :  { %v799_v32 = vpop.permute.xlu0 %798 }
0x1020   :  { %2820 = vmatmul.mubr.msk.f32.vlgmr.msra.gmra.mxu1 %vm275_vm1, %v799_v32  ;;  %v801_v47 = vsel %vm275_vm1, %v799_v32, 0.0  ;;  %v4022_v32 = vld [vmem:[%s4540_s3 + $0x90] sm:$0xff] }
0x1021   :  { %2858 = vmatpush3.msra.mxu1 %v1027_v14  ;;  %v1051_v14 = vld [vmem:[%s4541_s1 + $0x28] sm:$0xff] }
0x1022   :  { %2859 = vmatprep.subr.mxu1 %v1026_v16 }
0x1023   :  { %2860 = vmatpush3.msra.mxu1 %v1026_v16  ;;  %v1052_v16 = vld [vmem:[%s4541_s1 + $0x30] sm:$0xff] }
0x1024   :  { %2861 = vmatprep.subr.mxu1 %v1025_v20 }
0x1025   :  { %2862 = vmatpush3.msra.mxu1 %v1025_v20  ;;  %v1053_v20 = vld [vmem:[%s4541_s1 + $0x38] sm:$0xff] }
0x1026   :  { %2863 = vmatprep.subr.mxu1 %v1024_v24 }
0x1027   :  { %2864 = vmatpush3.msra.mxu1 %v1024_v24 }
0x1028   :  { %2865 = vmatprep.subr.mxu1 %v1023_v7 }
0x1029   :  { %2866 = vmatpush3.msra.mxu1 %v1023_v7 }
0x102a   :  { %2867 = vmatprep.subr.mxu1 %v1022_v13 }
0x102b   :  { %2868 = vmatpush3.msra.mxu1 %v1022_v13 }
0x102c   :  { %2869 = vmatprep.subr.mxu1 %v1021_v17 }
0x102d   :  { %2870 = vmatpush3.msra.mxu1 %v1021_v17 }
0x102e   :  { %2871 = vmatprep.subr.mxu1 %v1020_v21 }
0x102f   :  { %2872 = vmatpush3.msra.mxu1 %v1020_v21 }
0x1030   :  { %2873 = vmatprep.subr.mxu1 %v1019_v25 }
0x1031   :  { %2874 = vmatpush3.msra.mxu1 %v1019_v25 }
0x1032   :  { %2875 = vmatprep.subr.mxu1 %v1018_v29 }
0x1033   :  { %2876 = vmatpush3.msra.mxu1 %v1018_v29 }
0x1034   :  { %2877 = vmatprep.subr.mxu1 %v1017_v34 }
0x1035   :  { %2878 = vmatpush3.msra.mxu1 %v1017_v34 }
0x1036   :  { %2879 = vmatprep.subr.mxu1 %v1016_v40 }
0x1037   :  { %2880 = vmatpush3.msra.mxu1 %v1016_v40 }
0x1038   :  { %2881 = vmatprep.subr.mxu1 %v1015_v48 }
0x1039   :  { %2882 = vmatpush3.msra.mxu1 %v1015_v48 }
0x103a   :  { %2883 = vmatprep.subr.mxu1 %v1014_v30 }
0x103b   :  { %2884 = vmatpush3.msra.mxu1 %v1014_v30 }
0x10e0   :  { %v868_v33 = vpop.f32.mrf.mxu1 }
0x10e1   :  { %v869_v35 = vadd.f32 %v3638_v57, %v868_v33  ;;  %v1013_v33 = vld [vmem:[%s4540_s3 + $0x8] sm:$0xff] }
0x10e2   :  { %v2821_v36 = vpop.f32.mrf.mxu1  ;;  %2885 = vmatprep.subr.mxu1 %v1013_v33 }
0x10e3   :  { %880 = vrot.lane.b32.xlu1 %v869_v35, %s3328_s26  ;;  %v872_v50 = vadd.f32 %v869_v35, %v3633_v56  ;;  %v1046_v35 = vld [vmem:[%s4541_s1] sm:$0xff]  ;;  %2886 = vmatpush3.msra.mxu1 %v1013_v33 }
0x10e4   :  { %v1012_v36 = vld [vmem:[%s4540_s3] sm:$0xff]  ;;  %2889 = vmatprep.mubr.f32.mxu1 %v1046_v35 }
0x10e5   :  { %v2159_v38 = vmul.f32 -1.442695, %v872_v50  ;;  %v4039_v50 = vld [vmem:[%s4540_s3 + $0x88] sm:$0xff]  ;;  %2887 = vmatprep.subr.mxu1 %v1012_v36 }
0x10e6   :  { %2888 = vmatpush3.msra.mxu1 %v1012_v36 }
0x10e7   :  { %3266 = vpow2.f32 %v2159_v38  ;;  %v1047_v38 = vld [vmem:[%s4541_s1 + $0x8] sm:$0xff]  ;;  %2936 = vmatprep.subr.mxu1 %v3326_v2 }
0x10e8   :  { %2890 = vmatmul.mubr.f32.vlgmr.msra.gmra.mxu1 %v1047_v38 }
0x10e9   :  { %2937 = vmatpush3.msra.mxu1 %v3896_v18 }
0x10ea   :  { %2938 = vmatprep.subr.mxu1 %v3326_v2 }
0x10f4   :  { %v3267_v39 = vpop.eup %3266 }
0x10f5   :  { %v876_v41 = vadd.f32 1.0, %v3267_v39  ;;  %v4048_v39 = vld [vmem:[%s4540_s3 + $0x80] sm:$0xff] }
0x10f7   :  { %3268 = vrcp.f32 %v876_v41 }
0x1104   :  { %v3269_v42 = vpop.eup %3268 }
0x1105   :  { %v890_v58 = vsub.f32 1.0, %v3269_v42 }
0x1155   :  { %v881_v44 = vpop.permute.xlu1 %880 }
0x1156   :  { %v883_v45 = vmul.f32 %v3269_v42, %v881_v44 }
0x1158   :  { %885 = vrot.lane.b32.xlu0 %v883_v45, %s3328_s26 }
0x115c   :  { %897 = vrot.lane.b32.xlu0 %v801_v47, %s3330_s27 }
0x11ca   :  { %v886_v49 = vpop.permute.xlu0 %885 }
0x11cb   :  { %v888_v51 = vadd.f32 %v886_v49, %v3633_v56 }
0x11cd   :  { %3270 = vtanh.f32 %v888_v51 }
0x11ce   :  { %v898_v55 = vpop.permute.xlu0 %897 }
0x11cf   :  { %v900_v43 = vmul.f32 %v3269_v42, %v898_v55 }
0x11da   :  { %v3271_v53 = vpop.eup %3270 }
0x11db   :  { %892 = vrot.lane.b32.xlu1 %v3271_v53, %s3329_s2  ;;  %v4128_v53 = vld [vmem:[%s4540_s3 + $0x108] ss:$0 sm:$0xff] }
0x124d   :  { %v893_v59 = vpop.permute.xlu1 %892 }
0x124e   :  { %v895_v46 = vmul.f32 %v893_v59, %v890_v58 }
0x1250   :  { %v901_v60 = vadd.f32 %v900_v43, %v895_v46  ;;  %v4132_v43 = vpop.f32.mrf.mxu1  ;;  %v4137_v46 = vld [vmem:[%s4540_s3 + $0x100] ss:$0 sm:$0xff] }
0x1252   :  { %903 = vrot.lane.b32.xlu1 %v901_v60, %s3329_s2  ;;  %v1124_v60 = vpop.f32.mrf.mxu1 }
0x12c4   :  { %v904_v61 = vpop.permute.xlu1 %903 }
0x12c5   :  { %2855 = vmatmul.mubr.msk.f32.vlgmr.msra.gmra.mxu0 %vm275_vm1, %v904_v61  ;;  %v906_v10 = vsel %vm275_vm1, %v904_v61, 0.0  ;;  %v1125_v61 = vadd.f32 %v4137_v46, %v1124_v60 }
0x12c6   :  { %2933 = vmatprep.mubr.msk.f32.mxu0 %vm3327_vm0, %v3326_v2  ;;  %2902 = vmatpush3.msra.mxu0 %v3896_v18 }
0x12c7   :  { %2903 = vmatprep.subr.mxu0 %v3326_v2 }
0x1385   :  { %v973_v62 = vpop.f32.mrf.mxu0 }
0x1386   :  { %v974_v56 = vadd.f32 %v3638_v57, %v973_v62 }
0x1387   :  { %v2856_v63 = vpop.f32.mrf.mxu0 }
0x1388   :  { %985 = vrot.lane.b32.xlu0 %v974_v56, %s3328_s26  ;;  %v977_v0 = vadd.f32 %v974_v56, %v3631_v54 }
0x138a   :  { %v2161_v1 = vmul.f32 -1.442695, %v977_v0 }
0x138c   :  { %3272 = vpow2.f32 %v2161_v1 }
0x1399   :  { %v3273_v3 = vpop.eup %3272 }
0x139a   :  { %v981_v4 = vadd.f32 1.0, %v3273_v3 }
0x139c   :  { %3274 = vrcp.f32 %v981_v4 }
0x13a9   :  { %v3880_v5 = vpop.eup %3274 }
0x13aa   :  { %v995_v42 = vsub.f32 1.0, %v3880_v5 }
0x13fa   :  { %v986_v6 = vpop.permute.xlu0 %985 }
0x13fb   :  { %v988_v8 = vmul.f32 %v3880_v5, %v986_v6 }
0x13fd   :  { %990 = vrot.lane.b32.xlu1 %v988_v8, %s3328_s26 }
0x1401   :  { %1002 = vrot.lane.b32.xlu1 %v906_v10, %s3330_s27  ;;  %v1048_v10 = vld [vmem:[%s4541_s1 + $0x10] sm:$0xff] }
0x1402   :  { %2892 = vmatprep.mubr.f32.mxu1 %v1048_v10 }
0x146f   :  { %v991_v57 = vpop.permute.xlu1 %990 }
0x1470   :  { %v993_v12 = vadd.f32 %v991_v57, %v3631_v54  ;;  %v3902_v54 = vld [vmem:[%s4540_s3 + $0xf0] sm:$0xff]  ;;  %v1049_v57 = vld [vmem:[%s4541_s1 + $0x18] sm:$0xff] }
0x1471   :  { %2904 = vmatpush3.msra.mxu0 %v3902_v54  ;;  %2939 = vmatpush3.msra.mxu1 %v3902_v54 }
0x1472   :  { %3276 = vtanh.f32 %v993_v12  ;;  %2905 = vmatprep.subr.mxu0 %v3326_v2  ;;  %2940 = vmatprep.subr.mxu1 %v3326_v2  ;;  %v1050_v12 = vld [vmem:[%s4541_s1 + $0x20] sm:$0xff] }
0x1473   :  { %2906 = vmatpush3.msra.mxu0 %v3911_v22  ;;  %2941 = vmatpush3.msra.mxu1 %v3911_v22  ;;  %v1003_v41 = vpop.permute.xlu1 %1002 }
0x1474   :  { %2907 = vmatprep.subr.mxu0 %v3326_v2  ;;  %2942 = vmatprep.subr.mxu1 %v3326_v2  ;;  %v1005_v45 = vmul.f32 %v3880_v5, %v1003_v41 }
0x1475   :  { %2908 = vmatpush3.msra.mxu0 %v3921_v26  ;;  %2943 = vmatpush3.msra.mxu1 %v3921_v26 }
0x1476   :  { %2909 = vmatprep.subr.mxu0 %v3326_v2  ;;  %2944 = vmatprep.subr.mxu1 %v3326_v2 }
0x1477   :  { %2910 = vmatpush3.msra.mxu0 %v3932_v11  ;;  %2945 = vmatpush3.msra.mxu1 %v3932_v11 }
0x1478   :  { %2911 = vmatprep.subr.mxu0 %v3326_v2  ;;  %2946 = vmatprep.subr.mxu1 %v3326_v2 }
0x1479   :  { %2912 = vmatpush3.msra.mxu0 %v3942_v15  ;;  %2947 = vmatpush3.msra.mxu1 %v3942_v15 }
0x147a   :  { %2913 = vmatprep.subr.mxu0 %v3326_v2  ;;  %2948 = vmatprep.subr.mxu1 %v3326_v2 }
0x147b   :  { %2914 = vmatpush3.msra.mxu0 %v3952_v19  ;;  %2949 = vmatpush3.msra.mxu1 %v3952_v19 }
0x147c   :  { %2915 = vmatprep.subr.mxu0 %v3326_v2  ;;  %2950 = vmatprep.subr.mxu1 %v3326_v2 }
0x147d   :  { %2916 = vmatpush3.msra.mxu0 %v3962_v23  ;;  %2951 = vmatpush3.msra.mxu1 %v3962_v23 }
0x147e   :  { %2917 = vmatprep.subr.mxu0 %v3326_v2  ;;  %2952 = vmatprep.subr.mxu1 %v3326_v2 }
0x147f   :  { %v3277_v9 = vpop.eup %3276  ;;  %2918 = vmatpush3.msra.mxu0 %v3972_v27  ;;  %2953 = vmatpush3.msra.mxu1 %v3972_v27 }
0x1480   :  { %997 = vrot.lane.b32.xlu0 %v3277_v9, %s3329_s2  ;;  %2919 = vmatprep.subr.mxu0 %v3326_v2 }
0x1481   :  { %2920 = vmatpush3.msra.mxu0 %v3982_v31  ;;  %2954 = vmatprep.subr.mxu1 %v3326_v2 }
0x1482   :  { %2921 = vmatprep.subr.mxu0 %v3326_v2  ;;  %2955 = vmatpush3.msra.mxu1 %v3982_v31 }
0x1483   :  { %2922 = vmatpush3.msra.mxu0 %v3992_v37  ;;  %2956 = vmatprep.subr.mxu1 %v3326_v2 }
0x1484   :  { %2923 = vmatprep.subr.mxu0 %v3326_v2  ;;  %2957 = vmatpush3.msra.mxu1 %v3992_v37 }
0x1485   :  { %2924 = vmatpush3.msra.mxu0 %v4002_v52  ;;  %2958 = vmatprep.subr.mxu1 %v3326_v2 }
0x1486   :  { %2925 = vmatprep.subr.mxu0 %v3326_v2  ;;  %2959 = vmatpush3.msra.mxu1 %v4002_v52 }
0x1487   :  { %2926 = vmatpush3.msra.mxu0 %v4012_v28  ;;  %2960 = vmatprep.subr.mxu1 %v3326_v2 }
0x1488   :  { %2927 = vmatprep.subr.mxu0 %v3326_v2  ;;  %2961 = vmatpush3.msra.mxu1 %v4012_v28 }
0x1489   :  { %2928 = vmatpush3.msra.mxu0 %v4022_v32  ;;  %2962 = vmatprep.subr.mxu1 %v3326_v2 }
0x148a   :  { %2929 = vmatprep.subr.mxu0 %v3326_v2  ;;  %2963 = vmatpush3.msra.mxu1 %v4022_v32 }
0x148b   :  { %2930 = vmatpush3.msra.mxu0 %v4039_v50  ;;  %2964 = vmatprep.subr.mxu1 %v3326_v2 }
0x148c   :  { %2931 = vmatprep.subr.mxu0 %v3326_v2  ;;  %2965 = vmatpush3.msra.mxu1 %v4039_v50 }
0x148d   :  { %2932 = vmatpush3.msra.mxu0 %v4048_v39  ;;  %2966 = vmatprep.subr.mxu1 %v3326_v2 }
0x148e   :  { %2971 = vmatprep.subr.mxu0 %v3326_v2  ;;  %2967 = vmatpush3.msra.mxu1 %v4048_v39 }
0x148f   :  { %3006 = vmatprep.subr.mxu1 %v3326_v2  ;;  %2893 = vmatmul.mubr.f32.gmra.mxu1 %v1049_v57 }
0x1490   :  { %2895 = vmatprep.mubr.f32.mxu1 %v1050_v12 }
0x1493   :  { %2896 = vmatmul.mubr.f32.gmra.mxu1 %v1051_v14 }
0x1494   :  { %2898 = vmatprep.mubr.f32.mxu1 %v1052_v16 }
0x1497   :  { %2899 = vmatmul.mubr.f32.gmra.mxu1 %v1053_v20 }
0x1498   :  { %2968 = vmatprep.mubr.msk.f32.mxu1 %vm3327_vm0, %v3326_v2 }
0x14f2   :  { %v998_v44 = vpop.permute.xlu0 %997 }
0x14f3   :  { %v1000_v47 = vmul.f32 %v998_v44, %v995_v42  ;;  %v1130_v42 = vadd.f32 %v4132_v43, %v4137_v46 }
0x14f5   :  { %v1006_v49 = vadd.f32 %v1005_v45, %v1000_v47 }
0x14f7   :  { %1008 = vrot.lane.b32.xlu0 %v1006_v49, %s3329_s2 }
0x154f   :  { %v4203_v34 = vpop.f32.mrf.mxu1 }
0x1551   :  { %v4205_v40 = vpop.f32.mrf.mxu1 }
0x1552   :  { %v1135_v10 = vadd.f32 %v4137_v46, %v4205_v40 }
0x1553   :  { %v4207_v48 = vpop.f32.mrf.mxu1 }
0x1555   :  { %v4209_v30 = vpop.f32.mrf.mxu1 }
0x1557   :  { %v4211_v33 = vpop.f32.mrf.mxu1 }
0x1559   :  { %v4213_v35 = vpop.f32.mrf.mxu1 }
0x1569   :  { %v1009_v51 = vpop.permute.xlu0 %1008 }
0x156a   :  { %2934 = vmatmul.mubr.msk.f32.vlgmr.msra.gmra.mxu0 %vm275_vm1, %v1009_v51  ;;  %v1011_v5 = vsel %vm275_vm1, %v1009_v51, 0.0 }
0x156b   :  { %2972 = vmatpush3.msra.mxu0 %v3896_v18  ;;  %3003 = vmatprep.mubr.msk.f32.mxu0 %vm3327_vm0, %v3326_v2 }
0x156c   :  { %2973 = vmatprep.subr.mxu0 %v3326_v2 }
0x156d   :  { %2974 = vmatpush3.msra.mxu0 %v3902_v54 }
0x156e   :  { %2975 = vmatprep.subr.mxu0 %v3326_v2 }
0x156f   :  { %2976 = vmatpush3.msra.mxu0 %v3911_v22 }
0x1570   :  { %2977 = vmatprep.subr.mxu0 %v3326_v2 }
0x1571   :  { %2978 = vmatpush3.msra.mxu0 %v3921_v26 }
0x1572   :  { %2979 = vmatprep.subr.mxu0 %v3326_v2 }
0x1573   :  { %2980 = vmatpush3.msra.mxu0 %v3932_v11 }
0x1574   :  { %2981 = vmatprep.subr.mxu0 %v3326_v2 }
0x1575   :  { %2982 = vmatpush3.msra.mxu0 %v3942_v15 }
0x1576   :  { %2983 = vmatprep.subr.mxu0 %v3326_v2 }
0x1577   :  { %2984 = vmatpush3.msra.mxu0 %v3952_v19 }
0x1578   :  { %2985 = vmatprep.subr.mxu0 %v3326_v2 }
0x1579   :  { %2986 = vmatpush3.msra.mxu0 %v3962_v23 }
0x157a   :  { %2987 = vmatprep.subr.mxu0 %v3326_v2 }
0x157b   :  { %2988 = vmatpush3.msra.mxu0 %v3972_v27 }
0x157c   :  { %2989 = vmatprep.subr.mxu0 %v3326_v2 }
0x157d   :  { %2990 = vmatpush3.msra.mxu0 %v3982_v31 }
0x157e   :  { %2991 = vmatprep.subr.mxu0 %v3326_v2 }
0x157f   :  { %2992 = vmatpush3.msra.mxu0 %v3992_v37 }
0x1580   :  { %2993 = vmatprep.subr.mxu0 %v3326_v2 }
0x1581   :  { %2994 = vmatpush3.msra.mxu0 %v4002_v52 }
0x1582   :  { %2995 = vmatprep.subr.mxu0 %v3326_v2 }
0x1583   :  { %2996 = vmatpush3.msra.mxu0 %v4012_v28 }
0x1584   :  { %2997 = vmatprep.subr.mxu0 %v3326_v2 }
0x1585   :  { %2998 = vmatpush3.msra.mxu0 %v4022_v32 }
0x1586   :  { %2999 = vmatprep.subr.mxu0 %v3326_v2 }
0x1587   :  { %3000 = vmatpush3.msra.mxu0 %v4039_v50 }
0x1588   :  { %3001 = vmatprep.subr.mxu0 %v3326_v2 }
0x1589   :  { %3002 = vmatpush3.msra.mxu0 %v4048_v39 }
0x158a   :  { %3041 = vmatprep.subr.mxu0 %v3326_v2 }
0x162a   :  { %v1233_v55 = vpop.f32.mrf.mxu0 }
0x162b   :  { %v1234_v58 = vadd.f32 %v4128_v53, %v1233_v55 }
0x162c   :  { %v2935_v59 = vpop.f32.mrf.mxu0 }
0x162d   :  { %1245 = vrot.lane.b32.xlu1 %v1234_v58, %s3328_s26  ;;  %v1237_v62 = vadd.f32 %v1234_v58, %v1125_v61 }
0x162f   :  { %v2165_v56 = vmul.f32 -1.442695, %v1237_v62 }
0x1631   :  { %3278 = vpow2.f32 %v2165_v56 }
0x163e   :  { %v3279_v63 = vpop.eup %3278 }
0x163f   :  { %v1241_v0 = vadd.f32 1.0, %v3279_v63 }
0x1641   :  { %3280 = vrcp.f32 %v1241_v0 }
0x164e   :  { %v3281_v1 = vpop.eup %3280 }
0x164f   :  { %v1255_v9 = vsub.f32 1.0, %v3281_v1 }
0x169f   :  { %v1246_v3 = vpop.permute.xlu1 %1245 }
0x16a0   :  { %v1248_v4 = vmul.f32 %v3281_v1, %v1246_v3 }
0x16a2   :  { %1250 = vrot.lane.b32.xlu0 %v1248_v4, %s3328_s26 }
0x16a6   :  { %1262 = vrot.lane.b32.xlu0 %v1011_v5, %s3330_s27 }
0x1714   :  { %v1251_v6 = vpop.permute.xlu0 %1250 }
0x1715   :  { %v1253_v8 = vadd.f32 %v1251_v6, %v1125_v61 }
0x1717   :  { %3282 = vtanh.f32 %v1253_v8 }
0x1718   :  { %v1263_v7 = vpop.permute.xlu0 %1262 }
0x1719   :  { %v1265_v17 = vmul.f32 %v3281_v1, %v1263_v7 }
0x1724   :  { %v3283_v24 = vpop.eup %3282 }
0x1725   :  { %1257 = vrot.lane.b32.xlu1 %v3283_v24, %s3329_s2 }
0x1797   :  { %v1258_v13 = vpop.permute.xlu1 %1257 }
0x1798   :  { %v1260_v21 = vmul.f32 %v1258_v13, %v1255_v9 }
0x179a   :  { %v1266_v25 = vadd.f32 %v1265_v17, %v1260_v21 }
0x179c   :  { %1268 = vrot.lane.b32.xlu1 %v1266_v25, %s3329_s2 }
0x180e   :  { %v4165_v29 = vpop.permute.xlu1 %1268 }
0x180f   :  { %2969 = vmatmul.mubr.msk.f32.vlgmr.msra.gmra.mxu1 %vm275_vm1, %v4165_v29  ;;  %v1271_v59 = vsel %vm275_vm1, %v4165_v29, 0.0 }
0x1810   :  { %3007 = vmatpush3.msra.mxu1 %v3896_v18  ;;  %3038 = vmatprep.mubr.msk.f32.mxu1 %vm3327_vm0, %v3326_v2 }
0x1811   :  { %3008 = vmatprep.subr.mxu1 %v3326_v2 }
0x1812   :  { %3009 = vmatpush3.msra.mxu1 %v3902_v54 }
0x1813   :  { %3010 = vmatprep.subr.mxu1 %v3326_v2 }
0x1814   :  { %3011 = vmatpush3.msra.mxu1 %v3911_v22 }
0x1815   :  { %3012 = vmatprep.subr.mxu1 %v3326_v2 }
0x1816   :  { %3013 = vmatpush3.msra.mxu1 %v3921_v26 }
0x1817   :  { %3014 = vmatprep.subr.mxu1 %v3326_v2 }
0x1818   :  { %3015 = vmatpush3.msra.mxu1 %v3932_v11 }
0x1819   :  { %3016 = vmatprep.subr.mxu1 %v3326_v2 }
0x181a   :  { %3017 = vmatpush3.msra.mxu1 %v3942_v15 }
0x181b   :  { %3018 = vmatprep.subr.mxu1 %v3326_v2 }
0x181c   :  { %3019 = vmatpush3.msra.mxu1 %v3952_v19 }
0x181d   :  { %3020 = vmatprep.subr.mxu1 %v3326_v2 }
0x181e   :  { %3021 = vmatpush3.msra.mxu1 %v3962_v23 }
0x181f   :  { %3022 = vmatprep.subr.mxu1 %v3326_v2 }
0x1820   :  { %3023 = vmatpush3.msra.mxu1 %v3972_v27 }
0x1821   :  { %3024 = vmatprep.subr.mxu1 %v3326_v2 }
0x1822   :  { %3025 = vmatpush3.msra.mxu1 %v3982_v31 }
0x1823   :  { %3026 = vmatprep.subr.mxu1 %v3326_v2 }
0x1824   :  { %3027 = vmatpush3.msra.mxu1 %v3992_v37 }
0x1825   :  { %3028 = vmatprep.subr.mxu1 %v3326_v2 }
0x1826   :  { %3029 = vmatpush3.msra.mxu1 %v4002_v52 }
0x1827   :  { %3030 = vmatprep.subr.mxu1 %v3326_v2 }
0x1828   :  { %3031 = vmatpush3.msra.mxu1 %v4012_v28 }
0x1829   :  { %3032 = vmatprep.subr.mxu1 %v3326_v2 }
0x182a   :  { %3033 = vmatpush3.msra.mxu1 %v4022_v32 }
0x182b   :  { %3034 = vmatprep.subr.mxu1 %v3326_v2 }
0x182c   :  { %3035 = vmatpush3.msra.mxu1 %v4039_v50 }
0x182d   :  { %3036 = vmatprep.subr.mxu1 %v3326_v2 }
0x182e   :  { %3037 = vmatpush3.msra.mxu1 %v4048_v39 }
0x182f   :  { %3076 = vmatprep.subr.mxu1 %v3326_v2 }
0x18cf   :  { %v1338_v36 = vpop.f32.mrf.mxu1 }
0x18d0   :  { %v1339_v38 = vadd.f32 %v4128_v53, %v1338_v36 }
0x18d1   :  { %v2970_v41 = vpop.f32.mrf.mxu1 }
0x18d2   :  { %1350 = vrot.lane.b32.xlu0 %v1339_v38, %s3328_s26  ;;  %v1342_v44 = vadd.f32 %v1339_v38, %v1130_v42 }
0x18d4   :  { %v2167_v45 = vmul.f32 -1.442695, %v1342_v44 }
0x18d6   :  { %3284 = vpow2.f32 %v2167_v45 }
0x18e3   :  { %v3285_v47 = vpop.eup %3284 }
0x18e4   :  { %v1346_v49 = vadd.f32 1.0, %v3285_v47 }
0x18e6   :  { %3286 = vrcp.f32 %v1346_v49 }
0x18f3   :  { %v3287_v51 = vpop.eup %3286 }
0x18f4   :  { %v1360_v56 = vsub.f32 1.0, %v3287_v51 }
0x1944   :  { %v1351_v55 = vpop.permute.xlu0 %1350 }
0x1945   :  { %v1353_v58 = vmul.f32 %v3287_v51, %v1351_v55 }
0x1947   :  { %1355 = vrot.lane.b32.xlu1 %v1353_v58, %s3328_s26 }
0x194b   :  { %1367 = vrot.lane.b32.xlu1 %v1271_v59, %s3330_s27 }
0x19b9   :  { %v1356_v60 = vpop.permute.xlu1 %1355 }
0x19ba   :  { %v1358_v61 = vadd.f32 %v1356_v60, %v1130_v42 }
0x19bc   :  { %3288 = vtanh.f32 %v1358_v61 }
0x19bd   :  { %v1368_v62 = vpop.permute.xlu1 %1367 }
0x19be   :  { %v1370_v0 = vmul.f32 %v3287_v51, %v1368_v62  ;;  %v1140_v51 = vadd.f32 %v4203_v34, %v4137_v46 }
0x19c9   :  { %v3289_v43 = vpop.eup %3288 }
0x19ca   :  { %1362 = vrot.lane.b32.xlu0 %v3289_v43, %s3329_s2 }
0x1a3c   :  { %v1363_v63 = vpop.permute.xlu0 %1362 }
0x1a3d   :  { %v1365_v1 = vmul.f32 %v1363_v63, %v1360_v56 }
0x1a3f   :  { %v1371_v3 = vadd.f32 %v1370_v0, %v1365_v1 }
0x1a41   :  { %1373 = vrot.lane.b32.xlu0 %v1371_v3, %s3329_s2 }
0x1ab3   :  { %v4225_v4 = vpop.permute.xlu0 %1373 }
0x1ab4   :  { %3004 = vmatmul.mubr.msk.f32.vlgmr.msra.gmra.mxu0 %vm275_vm1, %v4225_v4  ;;  %v1376_v9 = vsel %vm275_vm1, %v4225_v4, 0.0 }
0x1ab5   :  { %3042 = vmatpush3.msra.mxu0 %v3896_v18  ;;  %3073 = vmatprep.mubr.msk.f32.mxu0 %vm3327_vm0, %v3326_v2 }
0x1ab6   :  { %3043 = vmatprep.subr.mxu0 %v3326_v2 }
0x1ab7   :  { %3044 = vmatpush3.msra.mxu0 %v3902_v54 }
0x1ab8   :  { %3045 = vmatprep.subr.mxu0 %v3326_v2 }
0x1ab9   :  { %3046 = vmatpush3.msra.mxu0 %v3911_v22 }
0x1aba   :  { %3047 = vmatprep.subr.mxu0 %v3326_v2 }
0x1abb   :  { %3048 = vmatpush3.msra.mxu0 %v3921_v26 }
0x1abc   :  { %3049 = vmatprep.subr.mxu0 %v3326_v2 }
0x1abd   :  { %3050 = vmatpush3.msra.mxu0 %v3932_v11 }
0x1abe   :  { %3051 = vmatprep.subr.mxu0 %v3326_v2 }
0x1abf   :  { %3052 = vmatpush3.msra.mxu0 %v3942_v15 }
0x1ac0   :  { %3053 = vmatprep.subr.mxu0 %v3326_v2 }
0x1ac1   :  { %3054 = vmatpush3.msra.mxu0 %v3952_v19 }
0x1ac2   :  { %3055 = vmatprep.subr.mxu0 %v3326_v2 }
0x1ac3   :  { %3056 = vmatpush3.msra.mxu0 %v3962_v23 }
0x1ac4   :  { %3057 = vmatprep.subr.mxu0 %v3326_v2 }
0x1ac5   :  { %3058 = vmatpush3.msra.mxu0 %v3972_v27 }
0x1ac6   :  { %3059 = vmatprep.subr.mxu0 %v3326_v2 }
0x1ac7   :  { %3060 = vmatpush3.msra.mxu0 %v3982_v31 }
0x1ac8   :  { %3061 = vmatprep.subr.mxu0 %v3326_v2 }
0x1ac9   :  { %3062 = vmatpush3.msra.mxu0 %v3992_v37 }
0x1aca   :  { %3063 = vmatprep.subr.mxu0 %v3326_v2 }
0x1acb   :  { %3064 = vmatpush3.msra.mxu0 %v4002_v52 }
0x1acc   :  { %3065 = vmatprep.subr.mxu0 %v3326_v2 }
0x1acd   :  { %3066 = vmatpush3.msra.mxu0 %v4012_v28 }
0x1ace   :  { %3067 = vmatprep.subr.mxu0 %v3326_v2 }
0x1acf   :  { %3068 = vmatpush3.msra.mxu0 %v4022_v32 }
0x1ad0   :  { %3069 = vmatprep.subr.mxu0 %v3326_v2 }
0x1ad1   :  { %3070 = vmatpush3.msra.mxu0 %v4039_v50 }
0x1ad2   :  { %3071 = vmatprep.subr.mxu0 %v3326_v2 }
0x1ad3   :  { %3072 = vmatpush3.msra.mxu0 %v4048_v39 }
0x1ad4   :  { %3111 = vmatprep.subr.mxu0 %v3326_v2 }
0x1b74   :  { %v1443_v5 = vpop.f32.mrf.mxu0 }
0x1b75   :  { %v1444_v6 = vadd.f32 %v4128_v53, %v1443_v5 }
0x1b76   :  { %v3005_v8 = vpop.f32.mrf.mxu0 }
0x1b77   :  { %1455 = vrot.lane.b32.xlu1 %v1444_v6, %s3328_s26  ;;  %v1447_v57 = vadd.f32 %v1444_v6, %v1135_v10 }
0x1b79   :  { %v2169_v12 = vmul.f32 -1.442695, %v1447_v57 }
0x1b7b   :  { %3290 = vpow2.f32 %v2169_v12 }
0x1b88   :  { %v3291_v14 = vpop.eup %3290 }
0x1b89   :  { %v1451_v16 = vadd.f32 1.0, %v3291_v14 }
0x1b8b   :  { %3292 = vrcp.f32 %v1451_v16 }
0x1b98   :  { %v3293_v20 = vpop.eup %3292 }
0x1b99   :  { %v1465_v40 = vsub.f32 1.0, %v3293_v20 }
0x1be9   :  { %v1456_v24 = vpop.permute.xlu1 %1455 }
0x1bea   :  { %v1458_v7 = vmul.f32 %v3293_v20, %v1456_v24 }
0x1bec   :  { %1460 = vrot.lane.b32.xlu0 %v1458_v7, %s3328_s26 }
0x1bf0   :  { %1472 = vrot.lane.b32.xlu0 %v1376_v9, %s3330_s27 }
0x1c5e   :  { %v1461_v13 = vpop.permute.xlu0 %1460 }
0x1c5f   :  { %v1463_v17 = vadd.f32 %v1461_v13, %v1135_v10 }
0x1c61   :  { %3294 = vtanh.f32 %v1463_v17 }
0x1c62   :  { %v1473_v25 = vpop.permute.xlu0 %1472 }
0x1c63   :  { %v1475_v38 = vmul.f32 %v3293_v20, %v1473_v25  ;;  %v1145_v20 = vadd.f32 %v4137_v46, %v4209_v30 }
0x1c6e   :  { %v3295_v21 = vpop.eup %3294 }
0x1c6f   :  { %1467 = vrot.lane.b32.xlu1 %v3295_v21, %s3329_s2 }
0x1ce1   :  { %v1468_v36 = vpop.permute.xlu1 %1467 }
0x1ce2   :  { %v1470_v41 = vmul.f32 %v1468_v36, %v1465_v40 }
0x1ce4   :  { %v1476_v42 = vadd.f32 %v1475_v38, %v1470_v41 }
0x1ce6   :  { %1478 = vrot.lane.b32.xlu1 %v1476_v42, %s3329_s2 }
0x1d58   :  { %v4273_v44 = vpop.permute.xlu1 %1478 }
0x1d59   :  { %3039 = vmatmul.mubr.msk.f32.vlgmr.msra.gmra.mxu1 %vm275_vm1, %v4273_v44  ;;  %v1481_v56 = vsel %vm275_vm1, %v4273_v44, 0.0 }
0x1d5a   :  { %3077 = vmatpush3.msra.mxu1 %v3896_v18  ;;  %3108 = vmatprep.mubr.msk.f32.mxu1 %vm3327_vm0, %v3326_v2 }
0x1d5b   :  { %3078 = vmatprep.subr.mxu1 %v3326_v2 }
0x1d5c   :  { %3079 = vmatpush3.msra.mxu1 %v3902_v54 }
0x1d5d   :  { %3080 = vmatprep.subr.mxu1 %v3326_v2 }
0x1d5e   :  { %3081 = vmatpush3.msra.mxu1 %v3911_v22 }
0x1d5f   :  { %3082 = vmatprep.subr.mxu1 %v3326_v2 }
0x1d60   :  { %3083 = vmatpush3.msra.mxu1 %v3921_v26 }
0x1d61   :  { %3084 = vmatprep.subr.mxu1 %v3326_v2 }
0x1d62   :  { %3085 = vmatpush3.msra.mxu1 %v3932_v11 }
0x1d63   :  { %3086 = vmatprep.subr.mxu1 %v3326_v2 }
0x1d64   :  { %3087 = vmatpush3.msra.mxu1 %v3942_v15 }
0x1d65   :  { %3088 = vmatprep.subr.mxu1 %v3326_v2 }
0x1d66   :  { %3089 = vmatpush3.msra.mxu1 %v3952_v19 }
0x1d67   :  { %3090 = vmatprep.subr.mxu1 %v3326_v2 }
0x1d68   :  { %3091 = vmatpush3.msra.mxu1 %v3962_v23 }
0x1d69   :  { %3092 = vmatprep.subr.mxu1 %v3326_v2 }
0x1d6a   :  { %3093 = vmatpush3.msra.mxu1 %v3972_v27 }
0x1d6b   :  { %3094 = vmatprep.subr.mxu1 %v3326_v2 }
0x1d6c   :  { %3095 = vmatpush3.msra.mxu1 %v3982_v31 }
0x1d6d   :  { %3096 = vmatprep.subr.mxu1 %v3326_v2 }
0x1d6e   :  { %3097 = vmatpush3.msra.mxu1 %v3992_v37 }
0x1d6f   :  { %3098 = vmatprep.subr.mxu1 %v3326_v2 }
0x1d70   :  { %3099 = vmatpush3.msra.mxu1 %v4002_v52 }
0x1d71   :  { %3100 = vmatprep.subr.mxu1 %v3326_v2 }
0x1d72   :  { %3101 = vmatpush3.msra.mxu1 %v4012_v28 }
0x1d73   :  { %3102 = vmatprep.subr.mxu1 %v3326_v2 }
0x1d74   :  { %3103 = vmatpush3.msra.mxu1 %v4022_v32 }
0x1d75   :  { %3104 = vmatprep.subr.mxu1 %v3326_v2 }
0x1d76   :  { %3105 = vmatpush3.msra.mxu1 %v4039_v50 }
0x1d77   :  { %3106 = vmatprep.subr.mxu1 %v3326_v2 }
0x1d78   :  { %3107 = vmatpush3.msra.mxu1 %v4048_v39 }
0x1d79   :  { %3146 = vmatprep.subr.mxu1 %v3326_v2 }
0x1e19   :  { %v1548_v45 = vpop.f32.mrf.mxu1 }
0x1e1a   :  { %v1549_v47 = vadd.f32 %v4128_v53, %v1548_v45 }
0x1e1b   :  { %v3040_v49 = vpop.f32.mrf.mxu1 }
0x1e1c   :  { %1560 = vrot.lane.b32.xlu0 %v1549_v47, %s3328_s26  ;;  %v1552_v55 = vadd.f32 %v1549_v47, %v1140_v51 }
0x1e1e   :  { %v2171_v58 = vmul.f32 -1.442695, %v1552_v55 }
0x1e20   :  { %3296 = vpow2.f32 %v2171_v58 }
0x1e2d   :  { %v3297_v59 = vpop.eup %3296 }
0x1e2e   :  { %v1556_v60 = vadd.f32 1.0, %v3297_v59 }
0x1e30   :  { %3298 = vrcp.f32 %v1556_v60 }
0x1e3d   :  { %v3299_v61 = vpop.eup %3298 }
0x1e3e   :  { %v1570_v3 = vsub.f32 1.0, %v3299_v61 }
0x1e8e   :  { %v1561_v43 = vpop.permute.xlu0 %1560 }
0x1e8f   :  { %v1563_v62 = vmul.f32 %v3299_v61, %v1561_v43 }
0x1e91   :  { %1565 = vrot.lane.b32.xlu1 %v1563_v62, %s3328_s26  ;;  %v2021_v62 = vld [vmem:[%s4542_s4 + $0x70] sm:$0xff] }
0x1e95   :  { %1577 = vrot.lane.b32.xlu1 %v1481_v56, %s3330_s27  ;;  %v2020_v56 = vld [vmem:[%s4542_s4 + $0x68] sm:$0xff] }
0x1f03   :  { %v1566_v63 = vpop.permute.xlu1 %1565 }
0x1f04   :  { %v1568_v0 = vadd.f32 %v1566_v63, %v1140_v51  ;;  %v2019_v63 = vld [vmem:[%s4542_s4 + $0x60] sm:$0xff] }
0x1f06   :  { %3300 = vtanh.f32 %v1568_v0  ;;  %v2018_v0 = vld [vmem:[%s4542_s4 + $0x58] sm:$0xff] }
0x1f07   :  { %v1578_v1 = vpop.permute.xlu1 %1577 }
0x1f08   :  { %v1580_v6 = vmul.f32 %v3299_v61, %v1578_v1  ;;  %v2015_v1 = vld [vmem:[%s4542_s4 + $0x40] sm:$0xff] }
0x1f13   :  { %v3301_v34 = vpop.eup %3300 }
0x1f14   :  { %1572 = vrot.lane.b32.xlu0 %v3301_v34, %s3329_s2  ;;  %v2016_v34 = vld [vmem:[%s4542_s4 + $0x48] sm:$0xff] }
0x1f86   :  { %v1573_v5 = vpop.permute.xlu0 %1572 }
0x1f87   :  { %v1575_v8 = vmul.f32 %v1573_v5, %v1570_v3  ;;  %v2014_v3 = vld [vmem:[%s4542_s4 + $0x38] sm:$0xff]  ;;  %v2013_v5 = vld [vmem:[%s4542_s4 + $0x30] sm:$0xff] }
0x1f89   :  { %v1581_v10 = vadd.f32 %v1580_v6, %v1575_v8  ;;  %v2012_v6 = vld [vmem:[%s4542_s4 + $0x28] sm:$0xff]  ;;  %v2011_v8 = vld [vmem:[%s4542_s4 + $0x20] sm:$0xff] }
0x1f8b   :  { %1583 = vrot.lane.b32.xlu0 %v1581_v10, %s3329_s2  ;;  %v2010_v10 = vld [vmem:[%s4542_s4 + $0x18] sm:$0xff] }
0x1ffd   :  { %v4321_v57 = vpop.permute.xlu0 %1583 }
0x1ffe   :  { %3074 = vmatmul.mubr.msk.f32.vlgmr.msra.gmra.mxu0 %vm275_vm1, %v4321_v57  ;;  %v1586_v40 = vsel %vm275_vm1, %v4321_v57, 0.0 }
0x1fff   :  { %3112 = vmatpush3.msra.mxu0 %v3896_v18  ;;  %3143 = vmatprep.mubr.msk.f32.mxu0 %vm3327_vm0, %v3326_v2 }
0x2000   :  { %3113 = vmatprep.subr.mxu0 %v3326_v2 }
0x2001   :  { %3114 = vmatpush3.msra.mxu0 %v3902_v54 }
0x2002   :  { %3115 = vmatprep.subr.mxu0 %v3326_v2 }
0x2003   :  { %3116 = vmatpush3.msra.mxu0 %v3911_v22 }
0x2004   :  { %3117 = vmatprep.subr.mxu0 %v3326_v2 }
0x2005   :  { %3118 = vmatpush3.msra.mxu0 %v3921_v26 }
0x2006   :  { %3119 = vmatprep.subr.mxu0 %v3326_v2 }
0x2007   :  { %3120 = vmatpush3.msra.mxu0 %v3932_v11 }
0x2008   :  { %3121 = vmatprep.subr.mxu0 %v3326_v2 }
0x2009   :  { %3122 = vmatpush3.msra.mxu0 %v3942_v15 }
0x200a   :  { %3123 = vmatprep.subr.mxu0 %v3326_v2 }
0x200b   :  { %3124 = vmatpush3.msra.mxu0 %v3952_v19 }
0x200c   :  { %3125 = vmatprep.subr.mxu0 %v3326_v2 }
0x200d   :  { %3126 = vmatpush3.msra.mxu0 %v3962_v23 }
0x200e   :  { %3127 = vmatprep.subr.mxu0 %v3326_v2 }
0x200f   :  { %3128 = vmatpush3.msra.mxu0 %v3972_v27 }
0x2010   :  { %3129 = vmatprep.subr.mxu0 %v3326_v2 }
0x2011   :  { %3130 = vmatpush3.msra.mxu0 %v3982_v31 }
0x2012   :  { %3131 = vmatprep.subr.mxu0 %v3326_v2 }
0x2013   :  { %3132 = vmatpush3.msra.mxu0 %v3992_v37 }
0x2014   :  { %3133 = vmatprep.subr.mxu0 %v3326_v2 }
0x2015   :  { %3134 = vmatpush3.msra.mxu0 %v4002_v52 }
0x2016   :  { %3135 = vmatprep.subr.mxu0 %v3326_v2 }
0x2017   :  { %3136 = vmatpush3.msra.mxu0 %v4012_v28 }
0x2018   :  { %3137 = vmatprep.subr.mxu0 %v3326_v2 }
0x2019   :  { %3138 = vmatpush3.msra.mxu0 %v4022_v32 }
0x201a   :  { %3139 = vmatprep.subr.mxu0 %v3326_v2 }
0x201b   :  { %3140 = vmatpush3.msra.mxu0 %v4039_v50 }
0x201c   :  { %3141 = vmatprep.subr.mxu0 %v3326_v2 }
0x201d   :  { %3142 = vmatpush3.msra.mxu0 %v4048_v39 }
0x20be   :  { %v1653_v12 = vpop.f32.mrf.mxu0 }
0x20bf   :  { %v1654_v14 = vadd.f32 %v4128_v53, %v1653_v12  ;;  %v2009_v12 = vld [vmem:[%s4542_s4 + $0x10] sm:$0xff] }
0x20c0   :  { %v3075_v16 = vpop.f32.mrf.mxu0 }
0x20c1   :  { %1665 = vrot.lane.b32.xlu1 %v1654_v14, %s3328_s26  ;;  %v1657_v24 = vadd.f32 %v1654_v14, %v1145_v20  ;;  %v2008_v14 = vld [vmem:[%s4542_s4 + $0x8] sm:$0xff]  ;;  %v2007_v16 = vld [vmem:[%s4542_s4] sm:$0xff] }
0x20c3   :  { %v2173_v7 = vmul.f32 -1.442695, %v1657_v24 }
0x20c5   :  { %3302 = vpow2.f32 %v2173_v7 }
0x20d2   :  { %v3303_v9 = vpop.eup %3302 }
0x20d3   :  { %v1661_v13 = vadd.f32 1.0, %v3303_v9 }
0x20d5   :  { %3304 = vrcp.f32 %v1661_v13 }
0x20e2   :  { %v3305_v17 = vpop.eup %3304 }
0x20e3   :  { %v1675_v42 = vsub.f32 1.0, %v3305_v17 }
0x2133   :  { %v1666_v21 = vpop.permute.xlu1 %1665 }
0x2134   :  { %v1668_v25 = vmul.f32 %v3305_v17, %v1666_v21 }
0x2136   :  { %1670 = vrot.lane.b32.xlu0 %v1668_v25, %s3328_s26 }
0x213a   :  { %1682 = vrot.lane.b32.xlu0 %v1586_v40, %s3330_s27 }
0x21a8   :  { %v1671_v36 = vpop.permute.xlu0 %1670 }
0x21a9   :  { %v1673_v38 = vadd.f32 %v1671_v36, %v1145_v20 }
0x21ab   :  { %3306 = vtanh.f32 %v1673_v38 }
0x21ac   :  { %v1683_v41 = vpop.permute.xlu0 %1682 }
0x21ad   :  { %v1685_v47 = vmul.f32 %v3305_v17, %v1683_v41 }
0x21b8   :  { %v3307_v30 = vpop.eup %3306 }
0x21b9   :  { %1677 = vrot.lane.b32.xlu1 %v3307_v30, %s3329_s2 }
0x222b   :  { %v1678_v45 = vpop.permute.xlu1 %1677 }
0x222c   :  { %v1680_v49 = vmul.f32 %v1678_v45, %v1675_v42  ;;  %v1155_v42 = vadd.f32 %v4137_v46, %v4213_v35 }
0x222e   :  { %v1686_v51 = vadd.f32 %v1685_v47, %v1680_v49 }
0x2230   :  { %1688 = vrot.lane.b32.xlu1 %v1686_v51, %s3329_s2 }
0x22a2   :  { %v4368_v55 = vpop.permute.xlu1 %1688 }
0x22a3   :  { %3109 = vmatmul.mubr.msk.f32.vlgmr.msra.gmra.mxu1 %vm275_vm1, %v4368_v55 }
0x22a4   :  { %3147 = vmatpush3.msra.mxu1 %v3896_v18  ;;  %3178 = vmatprep.mubr.msk.f32.mxu1 %vm3327_vm0, %v3326_v2 }
0x22a5   :  { %3148 = vmatprep.subr.mxu1 %v3326_v2 }
0x22a6   :  { %3149 = vmatpush3.msra.mxu1 %v3902_v54 }
0x22a7   :  { %3150 = vmatprep.subr.mxu1 %v3326_v2 }
0x22a8   :  { %3151 = vmatpush3.msra.mxu1 %v3911_v22 }
0x22a9   :  { %3152 = vmatprep.subr.mxu1 %v3326_v2 }
0x22aa   :  { %3153 = vmatpush3.msra.mxu1 %v3921_v26  ;;  %v1150_v26 = vadd.f32 %v4207_v48, %v4137_v46 }
0x22ab   :  { %3154 = vmatprep.subr.mxu1 %v3326_v2 }
0x22ac   :  { %3155 = vmatpush3.msra.mxu1 %v3932_v11 }
0x22ad   :  { %3156 = vmatprep.subr.mxu1 %v3326_v2 }
0x22ae   :  { %3157 = vmatpush3.msra.mxu1 %v3942_v15 }
0x22af   :  { %3158 = vmatprep.subr.mxu1 %v3326_v2 }
0x22b0   :  { %3159 = vmatpush3.msra.mxu1 %v3952_v19 }
0x22b1   :  { %3160 = vmatprep.subr.mxu1 %v3326_v2 }
0x22b2   :  { %3161 = vmatpush3.msra.mxu1 %v3962_v23 }
0x22b3   :  { %3162 = vmatprep.subr.mxu1 %v3326_v2 }
0x22b4   :  { %3163 = vmatpush3.msra.mxu1 %v3972_v27 }
0x22b5   :  { %3164 = vmatprep.subr.mxu1 %v3326_v2 }
0x22b6   :  { %3165 = vmatpush3.msra.mxu1 %v3982_v31 }
0x22b7   :  { %3166 = vmatprep.subr.mxu1 %v3326_v2 }
0x22b8   :  { %3167 = vmatpush3.msra.mxu1 %v3992_v37  ;;  %v1691_v37 = vsel %vm275_vm1, %v4368_v55, 0.0 }
0x22b9   :  { %3168 = vmatprep.subr.mxu1 %v3326_v2 }
0x22ba   :  { %3169 = vmatpush3.msra.mxu1 %v4002_v52 }
0x22bb   :  { %3170 = vmatprep.subr.mxu1 %v3326_v2 }
0x22bc   :  { %3171 = vmatpush3.msra.mxu1 %v4012_v28 }
0x22bd   :  { %3172 = vmatprep.subr.mxu1 %v3326_v2 }
0x22be   :  { %3173 = vmatpush3.msra.mxu1 %v4022_v32  ;;  %v2022_v32 = vld [vmem:[%s4542_s4 + $0x78] sm:$0xff] }
0x22bf   :  { %3174 = vmatprep.subr.mxu1 %v3326_v2  ;;  %3181 = vmatprep.subr.mxu0 %v2022_v32 }
0x22c0   :  { %3175 = vmatpush3.msra.mxu1 %v4039_v50 }
0x22c1   :  { %3176 = vmatprep.subr.mxu1 %v3326_v2 }
0x22c2   :  { %3177 = vmatpush3.msra.mxu1 %v4048_v39 }
0x2363   :  { %v1758_v18 = vpop.f32.mrf.mxu1 }
0x2364   :  { %v1759_v54 = vadd.f32 %v4128_v53, %v1758_v18 }
0x2365   :  { %v3110_v22 = vpop.f32.mrf.mxu1 }
0x2366   :  { %1770 = vrot.lane.b32.xlu0 %v1759_v54, %s3328_s26  ;;  %v1762_v11 = vadd.f32 %v1759_v54, %v1150_v26 }
0x2368   :  { %v2175_v15 = vmul.f32 -1.442695, %v1762_v11 }
0x236a   :  { %3308 = vpow2.f32 %v2175_v15 }
0x2377   :  { %v3309_v19 = vpop.eup %3308 }
0x2378   :  { %v1766_v23 = vadd.f32 1.0, %v3309_v19 }
0x237a   :  { %3310 = vrcp.f32 %v1766_v23 }
0x2387   :  { %v3311_v27 = vpop.eup %3310 }
0x2388   :  { %v1780_v48 = vsub.f32 1.0, %v3311_v27 }
0x23d8   :  { %v1771_v31 = vpop.permute.xlu0 %1770 }
0x23d9   :  { %v1773_v2 = vmul.f32 %v3311_v27, %v1771_v31 }
0x23db   :  { %1775 = vrot.lane.b32.xlu1 %v1773_v2, %s3328_s26 }
0x23df   :  { %1787 = vrot.lane.b32.xlu1 %v1691_v37, %s3330_s27 }
0x244d   :  { %v1776_v52 = vpop.permute.xlu1 %1775 }
0x244e   :  { %v1778_v28 = vadd.f32 %v1776_v52, %v1150_v26 }
0x2450   :  { %3312 = vtanh.f32 %v1778_v28 }
0x2451   :  { %v1788_v39 = vpop.permute.xlu1 %1787 }
0x2452   :  { %v1790_v59 = vmul.f32 %v3311_v27, %v1788_v39 }
0x245d   :  { %v3313_v50 = vpop.eup %3312 }
0x245e   :  { %1782 = vrot.lane.b32.xlu0 %v3313_v50, %s3329_s2  ;;  %v1160_v50 = vadd.f32 %v4211_v33, %v4137_v46 }
0x24d0   :  { %v1783_v58 = vpop.permute.xlu0 %1782 }
0x24d1   :  { %v1785_v60 = vmul.f32 %v1783_v58, %v1780_v48 }
0x24d3   :  { %v1791_v61 = vadd.f32 %v1790_v59, %v1785_v60 }
0x24d5   :  { %1793 = vrot.lane.b32.xlu0 %v1791_v61, %s3329_s2 }
0x2547   :  { %v4418_v43 = vpop.permute.xlu0 %1793 }
0x2548   :  { %3144 = vmatmul.mubr.msk.f32.vlgmr.msra.gmra.mxu0 %vm275_vm1, %v4418_v43  ;;  %v1796_v22 = vsel %vm275_vm1, %v4418_v43, 0.0 }
0x2549   :  { %3182 = vmatpush3.msra.mxu0 %v2022_v32  ;;  %3213 = vmatprep.mubr.msk.f32.mxu0 %vm275_vm1, %v4165_v29  ;;  %v2017_v29 = vld [vmem:[%s4542_s4 + $0x50] sm:$0xff] }
0x254a   :  { %3183 = vmatprep.subr.mxu0 %v2021_v62 }
0x254b   :  { %3184 = vmatpush3.msra.mxu0 %v2021_v62 }
0x254c   :  { %3185 = vmatprep.subr.mxu0 %v2020_v56 }
0x254d   :  { %3186 = vmatpush3.msra.mxu0 %v2020_v56 }
0x254e   :  { %3187 = vmatprep.subr.mxu0 %v2019_v63 }
0x254f   :  { %3188 = vmatpush3.msra.mxu0 %v2019_v63 }
0x2550   :  { %3189 = vmatprep.subr.mxu0 %v2018_v0 }
0x2551   :  { %3190 = vmatpush3.msra.mxu0 %v2018_v0 }
0x2552   :  { %3191 = vmatprep.subr.mxu0 %v2017_v29 }
0x2553   :  { %3192 = vmatpush3.msra.mxu0 %v2017_v29 }
0x2554   :  { %3193 = vmatprep.subr.mxu0 %v2016_v34 }
0x2555   :  { %3194 = vmatpush3.msra.mxu0 %v2016_v34 }
0x2556   :  { %3195 = vmatprep.subr.mxu0 %v2015_v1 }
0x2557   :  { %3196 = vmatpush3.msra.mxu0 %v2015_v1 }
0x2558   :  { %3197 = vmatprep.subr.mxu0 %v2014_v3 }
0x2559   :  { %3198 = vmatpush3.msra.mxu0 %v2014_v3 }
0x255a   :  { %3199 = vmatprep.subr.mxu0 %v2013_v5 }
0x255b   :  { %3200 = vmatpush3.msra.mxu0 %v2013_v5 }
0x255c   :  { %3201 = vmatprep.subr.mxu0 %v2012_v6 }
0x255d   :  { %3202 = vmatpush3.msra.mxu0 %v2012_v6 }
0x255e   :  { %3203 = vmatprep.subr.mxu0 %v2011_v8 }
0x255f   :  { %3204 = vmatpush3.msra.mxu0 %v2011_v8 }
0x2560   :  { %3205 = vmatprep.subr.mxu0 %v2010_v10 }
0x2561   :  { %3206 = vmatpush3.msra.mxu0 %v2010_v10 }
0x2562   :  { %3207 = vmatprep.subr.mxu0 %v2009_v12 }
0x2563   :  { %3208 = vmatpush3.msra.mxu0 %v2009_v12 }
0x2564   :  { %3209 = vmatprep.subr.mxu0 %v2008_v14 }
0x2565   :  { %3210 = vmatpush3.msra.mxu0 %v2008_v14 }
0x2566   :  { %3211 = vmatprep.subr.mxu0 %v2007_v16 }
0x2567   :  { %3212 = vmatpush3.msra.mxu0 %v2007_v16 }
0x2568   :  { %3214 = vmatmul.mubr.msk.f32.vlgmr.msra.gmra.mxu0 %vm275_vm1, %v4225_v4  ;;  %v4484_v4 = vld [vmem:[%s4542_s4 + $0x80] ss:$0 sm:$0xff] }
0x2569   :  { %3216 = vmatprep.mubr.msk.f32.mxu0 %vm275_vm1, %v4273_v44 }
0x256c   :  { %3217 = vmatmul.mubr.msk.f32.gmra.mxu0 %vm275_vm1, %v4321_v57 }
0x256d   :  { %3219 = vmatprep.mubr.msk.f32.mxu0 %vm275_vm1, %v4368_v55 }
0x2570   :  { %3220 = vmatmul.mubr.msk.f32.gmra.mxu0 %vm275_vm1, %v4418_v43 }
0x2608   :  { %v1863_v20 = vpop.f32.mrf.mxu0 }
0x2609   :  { %v1864_v24 = vadd.f32 %v4128_v53, %v1863_v20 }
0x260a   :  { %v3145_v7 = vpop.f32.mrf.mxu0 }
0x260b   :  { %1875 = vrot.lane.b32.xlu1 %v1864_v24, %s3328_s26  ;;  %v1867_v45 = vadd.f32 %v1864_v24, %v1155_v42 }
0x260d   :  { %v2177_v47 = vmul.f32 -1.442695, %v1867_v45 }
0x260f   :  { %3314 = vpow2.f32 %v2177_v47 }
0x261c   :  { %v3315_v49 = vpop.eup %3314 }
0x261d   :  { %v1871_v51 = vadd.f32 1.0, %v3315_v49 }
0x261f   :  { %3316 = vrcp.f32 %v1871_v51 }
0x2628   :  { %v3215_v44 = vpop.f32.mrf.mxu0 }
0x2629   :  { %v2100_v57 = vadd.f32 %v3215_v44, %v4484_v4 }
0x262a   :  { %v2094_v9 = vpop.f32.mrf.mxu0 }
0x262b   :  { %2134 = vst [vmem:[%s4543_s5 + $0x8] sm:$0xff] %v2100_v57  ;;  %v2095_v13 = vadd.f32 %v4484_v4, %v2094_v9 }
0x262c   :  { %v3218_v17 = vpop.f32.mrf.mxu0  ;;  %v3317_v55 = vpop.eup %3316 }
0x262d   :  { %2133 = vst [vmem:[%s4543_s5] sm:$0xff] %v2095_v13  ;;  %v2110_v21 = vadd.f32 %v3218_v17, %v4484_v4  ;;  %v1885_v19 = vsub.f32 1.0, %v3317_v55 }
0x262e   :  { %v2104_v25 = vpop.f32.mrf.mxu0 }
0x262f   :  { %2136 = vst [vmem:[%s4543_s5 + $0x18] sm:$0xff] %v2110_v21  ;;  %v2105_v40 = vadd.f32 %v4484_v4, %v2104_v25 }
0x2630   :  { %v3221_v36 = vpop.f32.mrf.mxu0 }
0x2631   :  { %2135 = vst [vmem:[%s4543_s5 + $0x10] sm:$0xff] %v2105_v40  ;;  %v2120_v38 = vadd.f32 %v3221_v36, %v4484_v4 }
0x2632   :  { %v2114_v30 = vpop.f32.mrf.mxu0 }
0x2633   :  { %2138 = vst [vmem:[%s4543_s5 + $0x28] sm:$0xff] %v2120_v38  ;;  %v2115_v41 = vadd.f32 %v4484_v4, %v2114_v30 }
0x2635   :  { %2137 = vst [vmem:[%s4543_s5 + $0x20] sm:$0xff] %v2115_v41 }
0x267d   :  { %v1876_v18 = vpop.permute.xlu1 %1875 }
0x267e   :  { %v1878_v54 = vmul.f32 %v3317_v55, %v1876_v18 }
0x2680   :  { %1880 = vrot.lane.b32.xlu0 %v1878_v54, %s3328_s26 }
0x2684   :  { %1892 = vrot.lane.b32.xlu0 %v1796_v22, %s3330_s27 }
0x26f2   :  { %v1881_v26 = vpop.permute.xlu0 %1880 }
0x26f3   :  { %v1883_v11 = vadd.f32 %v1881_v26, %v1155_v42 }
0x26f5   :  { %3318 = vtanh.f32 %v1883_v11 }
0x26f6   :  { %v1893_v15 = vpop.permute.xlu0 %1892 }
0x26f7   :  { %v1895_v27 = vmul.f32 %v3317_v55, %v1893_v15 }
0x2702   :  { %v3319_v35 = vpop.eup %3318 }
0x2703   :  { %1887 = vrot.lane.b32.xlu1 %v3319_v35, %s3329_s2 }
0x2775   :  { %v1888_v23 = vpop.permute.xlu1 %1887 }
0x2776   :  { %v1890_v31 = vmul.f32 %v1888_v23, %v1885_v19 }
0x2778   :  { %v1896_v2 = vadd.f32 %v1895_v27, %v1890_v31 }
0x277a   :  { %1898 = vrot.lane.b32.xlu1 %v1896_v2, %s3329_s2 }
0x27ec   :  { %v1899_v37 = vpop.permute.xlu1 %1898 }
0x27ed   :  { %3179 = vmatmul.mubr.msk.f32.vlgmr.msra.gmra.mxu1 %vm275_vm1, %v1899_v37  ;;  %3222 = vmatprep.mubr.msk.f32.mxu0 %vm275_vm1, %v1899_v37  ;;  %v1901_v62 = vsel %vm275_vm1, %v1899_v37, 0.0 }
0x28ad   :  { %v1968_v52 = vpop.f32.mrf.mxu1 }
0x28ae   :  { %v1969_v28 = vadd.f32 %v4128_v53, %v1968_v52 }
0x28af   :  { %v3180_v32 = vpop.f32.mrf.mxu1 }
0x28b0   :  { %1980 = vrot.lane.b32.xlu0 %v1969_v28, %s3328_s26  ;;  %v1972_v39 = vadd.f32 %v1969_v28, %v1160_v50 }
0x28b2   :  { %v2179_v48 = vmul.f32 -1.442695, %v1972_v39 }
0x28b4   :  { %3320 = vpow2.f32 %v2179_v48 }
0x28c1   :  { %v3321_v58 = vpop.eup %3320 }
0x28c2   :  { %v1976_v59 = vadd.f32 1.0, %v3321_v58 }
0x28c4   :  { %3322 = vrcp.f32 %v1976_v59 }
0x28d1   :  { %v3323_v60 = vpop.eup %3322 }
0x28d2   :  { %v1990_v33 = vsub.f32 1.0, %v3323_v60 }
0x2922   :  { %v1981_v61 = vpop.permute.xlu0 %1980 }
0x2923   :  { %v1983_v43 = vmul.f32 %v3323_v60, %v1981_v61 }
0x2925   :  { %1985 = vrot.lane.b32.xlu1 %v1983_v43, %s3328_s26 }
0x2929   :  { %1997 = vrot.lane.b32.xlu1 %v1901_v62, %s3330_s27 }
0x2997   :  { %v1986_v53 = vpop.permute.xlu1 %1985 }
0x2998   :  { %v1988_v56 = vadd.f32 %v1986_v53, %v1160_v50 }
0x299a   :  { %3324 = vtanh.f32 %v1988_v56 }
0x299b   :  { %v1998_v46 = vpop.permute.xlu1 %1997 }
0x299c   :  { %v2000_v29 = vmul.f32 %v3323_v60, %v1998_v46 }
0x29a7   :  { %v3325_v63 = vpop.eup %3324 }
0x29a8   :  { %1992 = vrot.lane.b32.xlu0 %v3325_v63, %s3329_s2 }
0x2a1a   :  { %v1993_v0 = vpop.permute.xlu0 %1992 }
0x2a1b   :  { %v1995_v34 = vmul.f32 %v1993_v0, %v1990_v33 }
0x2a1d   :  { %v2001_v1 = vadd.f32 %v2000_v29, %v1995_v34 }
0x2a1f   :  { %2003 = vrot.lane.b32.xlu0 %v2001_v1, %s3329_s2 }
0x2a91   :  { %v2004_v3 = vpop.permute.xlu0 %2003 }
0x2a92   :  { %3223 = vmatmul.mubr.msk.f32.gmra.mxu0 %vm275_vm1, %v2004_v3 }
0x2b52   :  { %v3224_v5 = vpop.f32.mrf.mxu0 }
0x2b53   :  { %v2130_v6 = vadd.f32 %v3224_v5, %v4484_v4 }
0x2b54   :  { %v2124_v8 = vpop.f32.mrf.mxu0 }
0x2b55   :  { %2140 = vst [vmem:[%s4543_s5 + $0x38] sm:$0xff] %v2130_v6  ;;  %v2125_v10 = vadd.f32 %v4484_v4, %v2124_v8 }
0x2b57   :  { %2139 = vst [vmem:[%s4543_s5 + $0x30] sm:$0xff] %v2125_v10 }

</bundles_post_ra>
